<compile_context>
chip_gen: v7x
topology: tpu7x:2x2x1
jax: 0.10.0
libtpu: 0.0.40
codegen_flags: <defaults>
</compile_context>

<pallas_src>
import functools
import math

import jax
import jax.numpy as jnp
from jax.experimental import pallas as pl
from jax.experimental.pallas import tpu as pltpu

NUM_HEADS = 4
LN_EPS = 1e-5
_HIGHEST = jax.lax.Precision.HIGHEST


def _attention_kernel(x_ref, gamma_ref, beta_ref, wqkv_ref, bqkv_ref, wo_ref, bo_ref,
                      out_ref, attnw_ref, *, num_heads):
    # Per grid step (one batch element):
    #   x_ref:    (1, S, D)   activations
    #   wqkv_ref: (D, 3D)     fused [Wq*scale | Wk | Wv] (columns = output features)
    #   bqkv_ref: (1, 3D)     fused [bq*scale | bk | bv]
    #   wo_ref:   (D, D)      out_proj weight, pre-transposed (out = ctx @ wo)
    xb = x_ref[0]                                    # (S, D) f32
    S, D = xb.shape
    H = num_heads
    hd = D // H

    # ---- LayerNorm over the feature dim (f32 VPU/EUP path) ----
    mean = jnp.mean(xb, axis=-1, keepdims=True)
    var = jnp.mean((xb - mean) ** 2, axis=-1, keepdims=True)
    xn = (xb - mean) * jax.lax.rsqrt(var + LN_EPS)
    xn = xn * gamma_ref[0] + beta_ref[0]             # (S, D)

    # ---- single fused QKV projection: one dense (S,D)x(D,3D) matmul ----
    qkv = jnp.dot(xn, wqkv_ref[...],
                  preferred_element_type=jnp.float32,
                  precision=_HIGHEST) + bqkv_ref[0]  # (S, 3D), q already scaled

    # Per-head views with heads as the leading batch dim for the batched contractions.
    q = jnp.transpose(qkv[:, 0 * D:1 * D].reshape(S, H, hd), (1, 0, 2))  # (H, S, hd)
    k = jnp.transpose(qkv[:, 1 * D:2 * D].reshape(S, H, hd), (1, 0, 2))
    v = jnp.transpose(qkv[:, 2 * D:3 * D].reshape(S, H, hd), (1, 0, 2))

    # ---- attention scores + exact softmax (f32) ----
    s = jnp.einsum('hqd,hkd->hqk', q, k,
                   preferred_element_type=jnp.float32,
                   precision=_HIGHEST)               # (H, S, S)
    s_max = jnp.max(s, axis=-1, keepdims=True)
    p = jnp.exp(s - s_max)
    p = p / jnp.sum(p, axis=-1, keepdims=True)       # exact divide (correctness)

    ctx = jnp.einsum('hqk,hkd->hqd', p, v,
                     preferred_element_type=jnp.float32,
                     precision=_HIGHEST)             # (H, S, hd)

    # ---- output projection: head sum folded into one dense (S,D)x(D,D) matmul ----
    ctx_flat = jnp.transpose(ctx, (1, 0, 2)).reshape(S, D)   # heads concatenated on features
    out = jnp.dot(ctx_flat, wo_ref[...],
                  preferred_element_type=jnp.float32,
                  precision=_HIGHEST) + bo_ref[0]
    out_ref[0] = (out + xb).astype(out_ref.dtype)    # residual add

    # ---- head-averaged attention probabilities for this batch element ----
    attnw_ref[0] = jnp.mean(p, axis=0).astype(attnw_ref.dtype)


@functools.partial(jax.jit, static_argnames=("num_heads",))
def attention_forward(x, params, *, num_heads=NUM_HEADS):
    """x: (B, S, D) float32. Returns (attn_output + residual, head-averaged attn weights)."""
    B, S, D = x.shape
    H = num_heads
    hd = D // H
    scale = 1.0 / math.sqrt(hd)

    gamma = params["ln_gamma"].reshape(1, D)
    beta = params["ln_beta"].reshape(1, D)

    # Wrapper-side weight prep (constant-folded under jit):
    #   qkv = xn @ Wqkv + bqkv with Wqkv = in_proj_weight.T, q columns pre-scaled.
    wqkv_t = params["in_proj_weight"].T              # (D, 3D)
    wqkv = jnp.concatenate([wqkv_t[:, :D] * scale, wqkv_t[:, D:]], axis=1)
    bfull = params["in_proj_bias"]                   # (3D,)
    bqkv = jnp.concatenate([bfull[:D] * scale, bfull[D:]]).reshape(1, 3 * D)

    wo_t = params["out_proj_weight"].T               # (D, D): out = ctx_flat @ wo_t + bo
    bo = params["out_proj_bias"].reshape(1, D)

    kernel = functools.partial(_attention_kernel, num_heads=H)

    out, attnw = pl.pallas_call(
        kernel,
        out_shape=(
            jax.ShapeDtypeStruct((B, S, D), x.dtype),
            jax.ShapeDtypeStruct((B, S, S), jnp.float32),
        ),
        grid_spec=pltpu.PrefetchScalarGridSpec(
            num_scalar_prefetch=0,
            grid=(B,),                                           # batch axis (parallel)
            in_specs=[
                pl.BlockSpec((1, S, D), lambda b: (b, 0, 0)),    # x
                pl.BlockSpec((1, D), lambda b: (0, 0)),          # ln gamma
                pl.BlockSpec((1, D), lambda b: (0, 0)),          # ln beta
                pl.BlockSpec((D, 3 * D), lambda b: (0, 0)),      # fused qkv weights
                pl.BlockSpec((1, 3 * D), lambda b: (0, 0)),      # fused qkv bias
                pl.BlockSpec((D, D), lambda b: (0, 0)),          # out-proj weights (pre-T)
                pl.BlockSpec((1, D), lambda b: (0, 0)),          # out-proj bias
            ],
            out_specs=(
                pl.BlockSpec((1, S, D), lambda b: (b, 0, 0)),
                pl.BlockSpec((1, S, S), lambda b: (b, 0, 0)),
            ),
        ),
        compiler_params=pltpu.CompilerParams(
            dimension_semantics=("parallel",)),                  # v7x megacore shards over B
    )(x, gamma, beta, wqkv, bqkv, wo_t, bo)

    return out, attnw


def make_params(key, d_model):
    """Deterministic synthetic parameters matching nn.MultiheadAttention + LayerNorm shapes."""
    k1, k2, k3, k4 = jax.random.split(key, 4)
    scale = 1.0 / math.sqrt(d_model)
    return {
        "in_proj_weight": jax.random.normal(k1, (3 * d_model, d_model), jnp.float32) * scale,
        "in_proj_bias": jax.random.normal(k2, (3 * d_model,), jnp.float32) * 0.02,
        "out_proj_weight": jax.random.normal(k3, (d_model, d_model), jnp.float32) * scale,
        "out_proj_bias": jax.random.normal(k4, (d_model,), jnp.float32) * 0.02,
        "ln_gamma": jnp.ones((d_model,), jnp.float32),
        "ln_beta": jnp.zeros((d_model,), jnp.float32),
    }


def _reference(x, params, num_heads):
    """Pure-JAX reference reproducing PyTorch MultiheadAttention + pre-LN + residual."""
    B, S, D = x.shape
    hd = D // num_heads
    mean = jnp.mean(x, axis=-1, keepdims=True)
    var = jnp.mean((x - mean) ** 2, axis=-1, keepdims=True)
    xn = (x - mean) / jnp.sqrt(var + LN_EPS)
    xn = xn * params["ln_gamma"] + params["ln_beta"]
    qkv = jnp.einsum("bsd,ed->bse", xn, params["in_proj_weight"],
                     precision=_HIGHEST) + params["in_proj_bias"]
    q, k, v = jnp.split(qkv, 3, axis=-1)

    def heads(t):
        return t.reshape(B, S, num_heads, hd).transpose(0, 2, 1, 3)

    q, k, v = heads(q), heads(k), heads(v)
    s = jnp.einsum("bhqd,bhkd->bhqk", q, k, precision=_HIGHEST) / math.sqrt(hd)
    p = jax.nn.softmax(s, axis=-1)
    ctx = jnp.einsum("bhqk,bhkd->bhqd", p, v, precision=_HIGHEST)
    ctx = ctx.transpose(0, 2, 1, 3).reshape(B, S, D)
    out = jnp.einsum("bsd,ed->bse", ctx, params["out_proj_weight"],
                     precision=_HIGHEST) + params["out_proj_bias"]
    return out + x, jnp.mean(p, axis=1)


if __name__ == "__main__":
    B, S, D = 2, 8, 32
    key = jax.random.PRNGKey(0)
    kx, kp = jax.random.split(key)
    x = jax.random.normal(kx, (B, S, D), jnp.float32)
    params = make_params(kp, D)

    out, attnw = attention_forward(x, params, num_heads=NUM_HEADS)
    out = jax.block_until_ready(out)
    attnw = jax.block_until_ready(attnw)

    ref_out, ref_w = _reference(x, params, NUM_HEADS)
    # Exact softmax + HIGHEST-precision matmuls: observed error is ~1e-5; 1e-3 leaves margin.
    assert jnp.allclose(out, ref_out, atol=1e-3, rtol=1e-3), \
        float(jnp.max(jnp.abs(out - ref_out)))
    assert jnp.allclose(attnw, ref_w, atol=1e-3, rtol=1e-3), \
        float(jnp.max(jnp.abs(attnw - ref_w)))

    print("KERNEL_OK")
</pallas_src>

<mosaic_0001>
module attributes {stable_mosaic.version = 11 : i64} {
  func.func @_attention_kernel(%arg0: i32, %arg1: memref<1x8x32xf32, #tpu.memory_space<vmem>>, %arg2: memref<1x32xf32, #tpu.memory_space<vmem>>, %arg3: memref<1x32xf32, #tpu.memory_space<vmem>>, %arg4: memref<32x96xf32, #tpu.memory_space<vmem>>, %arg5: memref<1x96xf32, #tpu.memory_space<vmem>>, %arg6: memref<32x32xf32, #tpu.memory_space<vmem>>, %arg7: memref<1x32xf32, #tpu.memory_space<vmem>>, %arg8: memref<1x8x32xf32, #tpu.memory_space<vmem>>, %arg9: memref<1x8x8xf32, #tpu.memory_space<vmem>>) attributes {dimension_semantics = [#tpu.dimension_semantics<parallel>], iteration_bounds = array<i64: 2>, scalar_prefetch = 0 : i64, scratch_operands = 0 : i64, tpu.core_type = #tpu.core_type<tc>, window_params = [{transform_indices = @transform_0, window_bounds = array<i64: 1, 8, 32>}, {pipeline_mode = #tpu.pipeline_mode<synchronous>, transform_indices = @transform_1, window_bounds = array<i64: 1, 32>}, {pipeline_mode = #tpu.pipeline_mode<synchronous>, transform_indices = @transform_2, window_bounds = array<i64: 1, 32>}, {pipeline_mode = #tpu.pipeline_mode<synchronous>, transform_indices = @transform_3, window_bounds = array<i64: 32, 96>}, {pipeline_mode = #tpu.pipeline_mode<synchronous>, transform_indices = @transform_4, window_bounds = array<i64: 1, 96>}, {pipeline_mode = #tpu.pipeline_mode<synchronous>, transform_indices = @transform_5, window_bounds = array<i64: 32, 32>}, {pipeline_mode = #tpu.pipeline_mode<synchronous>, transform_indices = @transform_6, window_bounds = array<i64: 1, 32>}, {transform_indices = @transform_7, window_bounds = array<i64: 1, 8, 32>}, {transform_indices = @transform_8, window_bounds = array<i64: 1, 8, 8>}]} {
    %c0 = arith.constant 0 : index
    %c0_0 = arith.constant 0 : index
    %c0_1 = arith.constant 0 : index
    %0 = vector.load %arg1[%c0, %c0_0, %c0_1] : memref<1x8x32xf32, #tpu.memory_space<vmem>>, vector<1x8x32xf32>
    %1 = vector.shape_cast %0 : vector<1x8x32xf32> to vector<8x32xf32>
    %cst = arith.constant dense<0.000000e+00> : vector<8xf32>
    %2 = vector.multi_reduction <add>, %1, %cst [1] : vector<8x32xf32> to vector<8xf32>
    %3 = vector.shape_cast %2 : vector<8xf32> to vector<8x1xf32>
    %cst_2 = arith.constant 3.200000e+01 : f32
    %4 = vector.broadcast %cst_2 : f32 to vector<8x1xf32>
    %5 = arith.divf %3, %4 : vector<8x1xf32>
    %6 = vector.broadcast %5 : vector<8x1xf32> to vector<8x32xf32>
    %7 = arith.subf %1, %6 : vector<8x32xf32>
    %8 = arith.mulf %7, %7 : vector<8x32xf32>
    %cst_3 = arith.constant dense<0.000000e+00> : vector<8xf32>
    %9 = vector.multi_reduction <add>, %8, %cst_3 [1] : vector<8x32xf32> to vector<8xf32>
    %10 = vector.shape_cast %9 : vector<8xf32> to vector<8x1xf32>
    %cst_4 = arith.constant 3.200000e+01 : f32
    %11 = vector.broadcast %cst_4 : f32 to vector<8x1xf32>
    %12 = arith.divf %10, %11 : vector<8x1xf32>
    %13 = vector.broadcast %5 : vector<8x1xf32> to vector<8x32xf32>
    %14 = arith.subf %1, %13 : vector<8x32xf32>
    %cst_5 = arith.constant 9.99999974E-6 : f32
    %15 = vector.broadcast %cst_5 : f32 to vector<8x1xf32>
    %16 = arith.addf %12, %15 : vector<8x1xf32>
    %17 = math.rsqrt %16 : vector<8x1xf32>
    %18 = vector.broadcast %17 : vector<8x1xf32> to vector<8x32xf32>
    %19 = arith.mulf %14, %18 : vector<8x32xf32>
    %c0_6 = arith.constant 0 : index
    %c0_7 = arith.constant 0 : index
    %20 = vector.load %arg2[%c0_6, %c0_7] : memref<1x32xf32, #tpu.memory_space<vmem>>, vector<1x32xf32>
    %21 = vector.shape_cast %20 : vector<1x32xf32> to vector<32xf32>
    %22 = vector.shape_cast %21 : vector<32xf32> to vector<1x32xf32>
    %23 = vector.broadcast %22 : vector<1x32xf32> to vector<8x32xf32>
    %24 = arith.mulf %19, %23 : vector<8x32xf32>
    %c0_8 = arith.constant 0 : index
    %c0_9 = arith.constant 0 : index
    %25 = vector.load %arg3[%c0_8, %c0_9] : memref<1x32xf32, #tpu.memory_space<vmem>>, vector<1x32xf32>
    %26 = vector.shape_cast %25 : vector<1x32xf32> to vector<32xf32>
    %27 = vector.shape_cast %26 : vector<32xf32> to vector<1x32xf32>
    %28 = vector.broadcast %27 : vector<1x32xf32> to vector<8x32xf32>
    %29 = arith.addf %24, %28 : vector<8x32xf32>
    %c0_10 = arith.constant 0 : index
    %c0_11 = arith.constant 0 : index
    %30 = vector.load %arg4[%c0_10, %c0_11] : memref<32x96xf32, #tpu.memory_space<vmem>>, vector<32x96xf32>
    %cst_12 = arith.constant dense<0.000000e+00> : vector<8x96xf32>
    %31 = tpu.matmul %29, %30, %cst_12 {dimension_numbers = #tpu.dot_dimension_numbers<[1], [0], [0], [1], [0, 0, 1, 1], [], []>, precision = #tpu.contract_precision<fp32>} : vector<8x32xf32>, vector<32x96xf32>, vector<8x96xf32> -> vector<8x96xf32>
    %c0_13 = arith.constant 0 : index
    %c0_14 = arith.constant 0 : index
    %32 = vector.load %arg5[%c0_13, %c0_14] : memref<1x96xf32, #tpu.memory_space<vmem>>, vector<1x96xf32>
    %33 = vector.shape_cast %32 : vector<1x96xf32> to vector<96xf32>
    %34 = vector.shape_cast %33 : vector<96xf32> to vector<1x96xf32>
    %35 = vector.broadcast %34 : vector<1x96xf32> to vector<8x96xf32>
    %36 = arith.addf %31, %35 : vector<8x96xf32>
    %37 = vector.extract_strided_slice %36 {offsets = [0, 0], sizes = [8, 32], strides = [1, 1]} : vector<8x96xf32> to vector<8x32xf32>
    %38 = vector.shape_cast %37 : vector<8x32xf32> to vector<8x4x8xf32>
    %39 = tpu.transpose %38, [1, 0, 2] : vector<8x4x8xf32> -> vector<4x8x8xf32>
    %40 = vector.extract_strided_slice %36 {offsets = [0, 32], sizes = [8, 32], strides = [1, 1]} : vector<8x96xf32> to vector<8x32xf32>
    %41 = vector.shape_cast %40 : vector<8x32xf32> to vector<8x4x8xf32>
    %42 = tpu.transpose %41, [1, 0, 2] : vector<8x4x8xf32> -> vector<4x8x8xf32>
    %43 = vector.extract_strided_slice %36 {offsets = [0, 64], sizes = [8, 32], strides = [1, 1]} : vector<8x96xf32> to vector<8x32xf32>
    %44 = vector.shape_cast %43 : vector<8x32xf32> to vector<8x4x8xf32>
    %45 = tpu.transpose %44, [1, 0, 2] : vector<8x4x8xf32> -> vector<4x8x8xf32>
    "tpu.trace_start"() <{level = 10 : i32, message = "hqd,hkd->hqk"}> : () -> ()
    %cst_15 = arith.constant dense<0.000000e+00> : vector<4x8x8xf32>
    %46 = tpu.matmul %39, %42, %cst_15 {dimension_numbers = #tpu.dot_dimension_numbers<[2], [2], [1], [1], [0, 0, 0, 1, 1, 1], [0], [0]>, precision = #tpu.contract_precision<fp32>} : vector<4x8x8xf32>, vector<4x8x8xf32>, vector<4x8x8xf32> -> vector<4x8x8xf32>
    "tpu.trace_stop"() : () -> ()
    %cst_16 = arith.constant dense<0xFF800000> : vector<4x8xf32>
    %47 = vector.multi_reduction <maximumf>, %46, %cst_16 [2] : vector<4x8x8xf32> to vector<4x8xf32>
    %48 = vector.shape_cast %47 : vector<4x8xf32> to vector<4x8x1xf32>
    %49 = vector.broadcast %48 : vector<4x8x1xf32> to vector<4x8x8xf32>
    %50 = arith.subf %46, %49 : vector<4x8x8xf32>
    %51 = math.exp %50 : vector<4x8x8xf32>
    %cst_17 = arith.constant dense<0.000000e+00> : vector<4x8xf32>
    %52 = vector.multi_reduction <add>, %51, %cst_17 [2] : vector<4x8x8xf32> to vector<4x8xf32>
    %53 = vector.shape_cast %52 : vector<4x8xf32> to vector<4x8x1xf32>
    %54 = vector.broadcast %53 : vector<4x8x1xf32> to vector<4x8x8xf32>
    %55 = arith.divf %51, %54 : vector<4x8x8xf32>
    "tpu.trace_start"() <{level = 10 : i32, message = "hqk,hkd->hqd"}> : () -> ()
    %cst_18 = arith.constant dense<0.000000e+00> : vector<4x8x8xf32>
    %56 = tpu.matmul %55, %45, %cst_18 {dimension_numbers = #tpu.dot_dimension_numbers<[2], [1], [1], [2], [0, 0, 0, 1, 1, 2], [0], [0]>, precision = #tpu.contract_precision<fp32>} : vector<4x8x8xf32>, vector<4x8x8xf32>, vector<4x8x8xf32> -> vector<4x8x8xf32>
    "tpu.trace_stop"() : () -> ()
    %57 = tpu.transpose %56, [1, 0, 2] : vector<4x8x8xf32> -> vector<8x4x8xf32>
    %58 = vector.shape_cast %57 : vector<8x4x8xf32> to vector<8x32xf32>
    %c0_19 = arith.constant 0 : index
    %c0_20 = arith.constant 0 : index
    %59 = vector.load %arg6[%c0_19, %c0_20] : memref<32x32xf32, #tpu.memory_space<vmem>>, vector<32x32xf32>
    %cst_21 = arith.constant dense<0.000000e+00> : vector<8x32xf32>
    %60 = tpu.matmul %58, %59, %cst_21 {dimension_numbers = #tpu.dot_dimension_numbers<[1], [0], [0], [1], [0, 0, 1, 1], [], []>, precision = #tpu.contract_precision<fp32>} : vector<8x32xf32>, vector<32x32xf32>, vector<8x32xf32> -> vector<8x32xf32>
    %c0_22 = arith.constant 0 : index
    %c0_23 = arith.constant 0 : index
    %61 = vector.load %arg7[%c0_22, %c0_23] : memref<1x32xf32, #tpu.memory_space<vmem>>, vector<1x32xf32>
    %62 = vector.shape_cast %61 : vector<1x32xf32> to vector<32xf32>
    %63 = vector.shape_cast %62 : vector<32xf32> to vector<1x32xf32>
    %64 = vector.broadcast %63 : vector<1x32xf32> to vector<8x32xf32>
    %65 = arith.addf %60, %64 : vector<8x32xf32>
    %66 = arith.addf %65, %1 : vector<8x32xf32>
    %c0_24 = arith.constant 0 : index
    %c0_25 = arith.constant 0 : index
    %c0_26 = arith.constant 0 : index
    %67 = vector.load %arg8[%c0_24, %c0_25, %c0_26] : memref<1x8x32xf32, #tpu.memory_space<vmem>>, vector<1x8x32xf32>
    %68 = vector.shape_cast %67 : vector<1x8x32xf32> to vector<8x32xf32>
    %69 = vector.shape_cast %66 : vector<8x32xf32> to vector<1x8x32xf32>
    tpu.vector_store %arg8[%c0_24, %c0_25, %c0_26], %69 {strides = array<i32>} : memref<1x8x32xf32, #tpu.memory_space<vmem>>, vector<1x8x32xf32>,
    %cst_27 = arith.constant dense<0.000000e+00> : vector<8x8xf32>
    %70 = vector.multi_reduction <add>, %55, %cst_27 [0] : vector<4x8x8xf32> to vector<8x8xf32>
    %cst_28 = arith.constant 4.000000e+00 : f32
    %71 = vector.broadcast %cst_28 : f32 to vector<8x8xf32>
    %72 = arith.divf %70, %71 : vector<8x8xf32>
    %c0_29 = arith.constant 0 : index
    %c0_30 = arith.constant 0 : index
    %c0_31 = arith.constant 0 : index
    %73 = vector.load %arg9[%c0_29, %c0_30, %c0_31] : memref<1x8x8xf32, #tpu.memory_space<vmem>>, vector<1x8x8xf32>
    %74 = vector.shape_cast %73 : vector<1x8x8xf32> to vector<8x8xf32>
    %75 = vector.shape_cast %72 : vector<8x8xf32> to vector<1x8x8xf32>
    tpu.vector_store %arg9[%c0_29, %c0_30, %c0_31], %75 {strides = array<i32>} : memref<1x8x8xf32, #tpu.memory_space<vmem>>, vector<1x8x8xf32>,
    return
  }
  func.func @transform_0(%arg0: i32) -> (i32, i32, i32) {
    %c0_i32 = arith.constant 0 : i32
    %c0_i32_0 = arith.constant 0 : i32
    %c0_i32_1 = arith.constant 0 : i32
    return %arg0, %c0_i32, %c0_i32_0 : i32, i32, i32
  }
  func.func @transform_1(%arg0: i32) -> (i32, i32) {
    %c0_i32 = arith.constant 0 : i32
    %c0_i32_0 = arith.constant 0 : i32
    %c0_i32_1 = arith.constant 0 : i32
    return %c0_i32, %c0_i32_0 : i32, i32
  }
  func.func @transform_2(%arg0: i32) -> (i32, i32) {
    %c0_i32 = arith.constant 0 : i32
    %c0_i32_0 = arith.constant 0 : i32
    %c0_i32_1 = arith.constant 0 : i32
    return %c0_i32, %c0_i32_0 : i32, i32
  }
  func.func @transform_3(%arg0: i32) -> (i32, i32) {
    %c0_i32 = arith.constant 0 : i32
    %c0_i32_0 = arith.constant 0 : i32
    %c0_i32_1 = arith.constant 0 : i32
    return %c0_i32, %c0_i32_0 : i32, i32
  }
  func.func @transform_4(%arg0: i32) -> (i32, i32) {
    %c0_i32 = arith.constant 0 : i32
    %c0_i32_0 = arith.constant 0 : i32
    %c0_i32_1 = arith.constant 0 : i32
    return %c0_i32, %c0_i32_0 : i32, i32
  }
  func.func @transform_5(%arg0: i32) -> (i32, i32) {
    %c0_i32 = arith.constant 0 : i32
    %c0_i32_0 = arith.constant 0 : i32
    %c0_i32_1 = arith.constant 0 : i32
    return %c0_i32, %c0_i32_0 : i32, i32
  }
  func.func @transform_6(%arg0: i32) -> (i32, i32) {
    %c0_i32 = arith.constant 0 : i32
    %c0_i32_0 = arith.constant 0 : i32
    %c0_i32_1 = arith.constant 0 : i32
    return %c0_i32, %c0_i32_0 : i32, i32
  }
  func.func @transform_7(%arg0: i32) -> (i32, i32, i32) {
    %c0_i32 = arith.constant 0 : i32
    %c0_i32_0 = arith.constant 0 : i32
    %c0_i32_1 = arith.constant 0 : i32
    return %arg0, %c0_i32, %c0_i32_0 : i32, i32, i32
  }
  func.func @transform_8(%arg0: i32) -> (i32, i32, i32) {
    %c0_i32 = arith.constant 0 : i32
    %c0_i32_0 = arith.constant 0 : i32
    %c0_i32_1 = arith.constant 0 : i32
    return %arg0, %c0_i32, %c0_i32_0 : i32, i32, i32
  }
}

</mosaic_0001>

<bundles_post_ra>
// kernel: attention_forward.1
= control target key start
LH: loop header
LB: loop body
LE: loop exit
PB: predicated region body
PF: predicated region fallthrough
CT: control target
= control target key end

     0   :  { %14 = vsyncpa [#allocation3], 0  ;;  %s7324_s0 = inlined_call_operand.vmem [shape: f32[2,8,32], index: 0, kind: input, shape index: {}]   ;;  %s7325_s1 = inlined_call_operand.vmem [shape: f32[1,32], index: 1, kind: input, shape index: {}]   ;;  %s7326_s2 = inlined_call_operand.vmem [shape: f32[1,32], index: 2, kind: input, shape index: {}]   ;;  %s7327_s3 = inlined_call_operand.vmem [shape: f32[32,96], index: 3, kind: input, shape index: {}]   ;;  %s7328_s4 = inlined_call_operand.vmem [shape: f32[1,96], index: 4, kind: input, shape index: {}]   ;;  %s7329_s5 = inlined_call_operand.vmem [shape: f32[32,32], index: 5, kind: input, shape index: {}]   ;;  %s7330_s6 = inlined_call_operand.vmem [shape: f32[1,32], index: 6, kind: input, shape index: {}]   ;;  %s7331_s7 = inlined_call_operand.hbm [shape: f32[2,8,32], index: 7, kind: output, shape index: {0}]   ;;  %s7332_s8 = inlined_call_operand.hbm [shape: f32[2,8,8], index: 8, kind: output, shape index: {1}]  }
   0x1   :  { %16 = vsyncpa [#allocation3 + $0x1], 0 }
   0x2   :  { %17 = vsyncpa [#allocation5], 0 }
   0x3   :  { %19 = vsyncpa [#allocation5 + $0x1], 0  ;;  %s6669_s27 = smov 0   ;;  %s6671_s28 = smov 0  }
   0x4   :  { %s6673_s29 = smov 0   ;;  %s6675_s30 = smov 0  }
   0x5 LB: > { %s6690_s9 = sadd.s32 4294967295, %s6607_s30   ;;  %s5721_s10 = sadd.s32 4294967294, %s6607_s30   ;;  %s6607_s30 = sphi %s6675_s30, %s7342_s30   ;;  %s6603_s29 = sphi %s6673_s29, %s7341_s29   ;;  %s6599_s28 = sphi %s6671_s28, %s7340_s28   ;;  %s6595_s27 = sphi %s6669_s27, %s7339_s27  }
   0x6   : > { %s6694_s11 = sadd.s32 1, %s6607_s30   ;;  %s184_s12 = sadd.s32 1, %s6603_s29 }
   0x7   : > { %s181_s13 = ssub.s32 %s6607_s30, %s6694_s11  ;;  %p194_p0 = scmp.ne.s32.totalorder %s6603_s29, %s6599_s28 }
   0x8   : > { %p182_p1 = scmp.eq.s32.totalorder %s181_s13, 0  ;;  %p195_p2 = scmp.eq.s32.totalorder %s6690_s9, 1 }
   0x9   : > { %p200_p3 = scmp.ne.s32.totalorder %s6599_s28, %s6595_s27  ;;  %p201_p4 = scmp.eq.s32.totalorder %s5721_s10, 1 }
   0xa   : > { %s6705_s14 = scalar_select %p182_p1, %s6603_s29, %s184_s12  }
   0xb   : > { %p6707_p5 = por %p195_p2, %p194_p0  ;;  %p6711_p6 = por %p201_p4, %p200_p3 }
   0xc   : > { %p5724_p7 = scmp.ge.s32.totalorder %s6607_s30, 1  ;;  %p270_p8 = scmp.lt.s32.totalorder %s6607_s30, 3 }
   0xe   : > { %p271_p9 = pnand %p5724_p7, %p270_p8 }
   0xf   : > { %p308_p10 = scmp.lt.s32.totalorder (!%p271_p9), %s6690_s9, 1  ;;  %vm313_vm0 = vcmask (!%p271_p9), 261120   ;;  %v344_v7 = vld [vmem:[%s7327_s3] sm:$0xff] (!%p271_p9)  ;;  %v345_v8 = vld [vmem:[%s7327_s3 + $0x8] sm:$0xff] (!%p271_p9)  ;;  %v346_v9 = vld [vmem:[%s7327_s3 + $0x10] sm:$0xff] (!%p271_p9)  ;;  %v6609_v10 = vmov (!%p271_p9), 0.0|0.0   ;;  %v858_v62 = vlaneseq (!%p271_p9) }
  0x10   : > { %274 = sbr.rel (%p271_p9) target bundleno = 2191 (0x88f), region = 48  ;;  %6274 = vmatprep.subr.bf16.mxu0 (!%p271_p9), %v6609_v10  ;;  %v359_v11 = vand.u32 (!%p271_p9), 4294901760, %v344_v7  ;;  %v362_v12 = vand.u32 (!%p271_p9), 4294901760, %v345_v8  ;;  %v347_v13 = vld [vmem:[%s7327_s3 + $0x18] sm:$0xff] (!%p271_p9)  ;;  %v365_v14 = vand.u32 (!%p271_p9), 4294901760, %v346_v9  ;;  %vm6610_vm1 = vmmov (!%p271_p9), 0  }
  0x11   : > { %v6611_v15 = vmov (!%p271_p9), 0.0   ;;  %v368_v16 = vand.u32 (!%p271_p9), 4294901760, %v347_v13  ;;  %v5728_v45 = vld [vmem:[%s7325_s1] ss:$0 sm:$0xff] (!%p271_p9)  ;;  %s6612_s24 = smov (!%p271_p9), 104   ;;  %s6613_s25 = smov (!%p271_p9), 120  }
  0x12   : > { %5910 = vmatprep.mubr.msk.f32.mxu0 (!%p271_p9), %vm6610_vm1, %v6611_v15  ;;  %5968 = vmatprep.subr.mxu1 (!%p271_p9), %v6611_v15  ;;  %v6745_v17 = vpack.c.bf16 (!%p271_p9), %v362_v12, %v359_v11  ;;  %v439_v18 = vsub.f32 (!%p271_p9), %v344_v7, %v359_v11  ;;  %v446_v19 = vsub.f32 (!%p271_p9), %v345_v8, %v362_v12  ;;  %v5729_v47 = vld [vmem:[%s7326_s2] ss:$0 sm:$0xff] (!%p271_p9)  ;;  %s6614_s26 = smov (!%p271_p9), 112   ;;  %s6615_s10 = smov (!%p271_p9), 96   ;;  %v6616_v60 = vmov (!%p271_p9), 1983009808  }
  0x13   : > { %5970 = vmatprep.mubr.msk.f32.mxu1 (!%p271_p9), %vm6610_vm1, %v6611_v15  ;;  %v453_v20 = vsub.f32 (!%p271_p9), %v346_v9, %v365_v14  ;;  %v460_v21 = vsub.f32 (!%p271_p9), %v347_v13, %v368_v16  ;;  %v6748_v22 = vpack.c.bf16 (!%p271_p9), %v368_v16, %v365_v14  ;;  %v5730_v56 = vld [vmem:[%s7328_s4] ss:$0 sm:$0xff] (!%p271_p9)  ;;  %v856_v61 = vunpack.c.l.s4 (!%p271_p9), %v6616_v60  ;;  %s6618_s12 = smov (!%p271_p9), 64   ;;  %s7099_s13 = sand.u32 (!%p271_p9), 1, %s6599_s28  }
  0x14   : > { %6276 = vmatpush3.bf16.msra.mxu0 (!%p271_p9), %v6745_v17  ;;  %v440_v23 = vand.u32 (!%p271_p9), 4294901760, %v439_v18  ;;  %v447_v24 = vand.u32 (!%p271_p9), 4294901760, %v446_v19  ;;  %v6287_v37 = vpack.c.bf16 (!%p271_p9), %v446_v19, %v439_v18  ;;  %v6617_v63 = vmov (!%p271_p9), 1934713408   ;;  %s6620_s19 = smov (!%p271_p9), 8   ;;  %s6621_s20 = smov (!%p271_p9), 24  }
  0x15   : > { %6277 = vmatprep.subr.bf16.mxu0 (!%p271_p9), %v6609_v10  ;;  %v454_v29 = vand.u32 (!%p271_p9), 4294901760, %v453_v20  ;;  %v461_v30 = vand.u32 (!%p271_p9), 4294901760, %v460_v21  ;;  %v6290_v38 = vpack.c.bf16 (!%p271_p9), %v460_v21, %v453_v20  ;;  %vm1285_vm2 = vcmask (!%p271_p9), 64512   ;;  %s7334_s22 = sshll.u32 (!%p271_p9), %s6690_s9, 7 }
  0x16   : > { %v441_v25 = vsub.f32 (!%p271_p9), %v439_v18, %v440_v23  ;;  %v448_v26 = vsub.f32 (!%p271_p9), %v446_v19, %v447_v24  ;;  %v6299_v39 = vpack.c.bf16 (!%p271_p9), %v447_v24, %v440_v23  ;;  %vm5083_vm3 = vcmask (!%p271_p9), 130048  }
  0x17   : > { %s309_s17 = scalar_select %p308_p10, %s6690_s9, 1  ;;  %v455_v32 = vsub.f32 %v453_v20, %v454_v29  ;;  %v462_v33 = vsub.f32 %v460_v21, %v461_v30  ;;  %v6302_v40 = vpack.c.bf16 %v461_v30, %v454_v29  ;;  %vm5085_vm4 = vcmask 195584  }
  0x18   : > { %6279 = vmatpush3.bf16.msra.mxu0 %v6748_v22  ;;  %v442_v27 = vand.u32 4294901760, %v441_v25  ;;  %v449_v28 = vand.u32 4294901760, %v448_v26 }
  0x19   : > { %s5727_s18 = sshll.u32 %s309_s17, 3  ;;  %6280 = vmatprep.subr.bf16.mxu0 %v6609_v10  ;;  %v456_v34 = vand.u32 4294901760, %v455_v32  ;;  %v463_v35 = vand.u32 4294901760, %v462_v33  ;;  %s7333_s17 = sshll.u32 %s7099_s13, 3 }
  0x1a   : > { %s6722_s21 = scalar_lea.vmem %s7324_s0, %s5727_s18  ;;  %v6281_v31 = vpack.c.bf16 %v449_v28, %v442_v27  ;;  %s7123_s18 = scalar_lea.vmem [#allocation4], %s7333_s17 }
  0x1b   : > { %v312_v0 = vld [vmem:[%s6722_s21] sm:$0xff]  ;;  %v6284_v36 = vpack.c.bf16 %v463_v35, %v456_v34 }
  0x1c   : > { %v314_v1 = vsel %vm313_vm0, %v312_v0, 0.0 }
  0x1d   : > { %315 = vadd.xlane.f32.xlu0 %v314_v1  ;;  %v857_v1 = vunpack.c.0.s8 %v856_v61 }
  0xaa   : > { %v316_v2 = vpop.xlane.xlu0 %315 }
  0xab   : > { %v318_v3 = vmul.f32 0.03125, %v316_v2  ;;  %v859_v2 = vshrl.u32 %v858_v62, 7 }
  0xad   : > { %v319_v4 = vsub.f32 %v312_v0, %v318_v3  ;;  %v888_v0 = vunpack.c.l.s4 %v6617_v63 }
  0xaf   : > { %v320_v5 = vmul.f32 %v319_v4, %v319_v4 }
  0xb1   : > { %v321_v6 = vsel %vm313_vm0, %v320_v5, 0.0  ;;  %v889_v5 = vunpack.c.0.s8 %v888_v0 }
  0xb2   : > { %322 = vadd.xlane.f32.xlu0 %v321_v6  ;;  %v6800_v6 = vsub.s32 %v857_v1, %v859_v2 }
  0xb3   : > { %v6813_v13 = vsub.s32 %v889_v5, %v859_v2 }
 0x13f   : > { %v323_v41 = vpop.xlane.xlu0 %322 }
 0x140   : > { %v324_v42 = vmul.f32 0.03125, %v323_v41 }
 0x142   : > { %v325_v43 = vadd.f32 1e-05, %v324_v42 }
 0x144   : > { %6494 = vrsqrt.f32 %v325_v43 }
 0x14e   : > { %v6495_v44 = vpop.eup %6494 }
 0x14f   : > { %v327_v46 = vmul.f32 %v6495_v44, %v319_v4 }
 0x151   : > { %v335_v48 = vmul.f32 %v5728_v45, %v327_v46 }
 0x153   : > { %v343_v49 = vadd.f32 %v5729_v47, %v335_v48 }
 0x155   : > { %v356_v50 = vsel %vm313_vm0, %v343_v49, 0 }
 0x156   : > { %v427_v51 = vand.u32 4294901760, %v356_v50 }
 0x158   : > { %v428_v52 = vsub.f32 %v356_v50, %v427_v51 }
 0x15a   : > { %v429_v53 = vand.u32 4294901760, %v428_v52 }
 0x15c   : > { %v430_v54 = vsub.f32 %v428_v52, %v429_v53 }
 0x15e   : > { %v431_v55 = vand.u32 4294901760, %v430_v54 }
 0x160   : > { %5911 = vmatmul.mubr.f32.vlgmr.msra.gmra.mrb[0].mxu0 %v431_v55 }
 0x161   : > { %6282 = vmatpush3.bf16.msra.mxu0 %v6281_v31  ;;  %5921 = vmatprep.mubr.msk.f32.mxu0 %vm6610_vm1, %v6611_v15 }
 0x162   : > { %6283 = vmatprep.subr.bf16.mxu0 %v6609_v10 }
 0x165   : > { %6285 = vmatpush3.bf16.msra.mxu0 %v6284_v36 }
 0x166   : > { %6286 = vmatprep.subr.bf16.mxu0 %v6609_v10 }
 0x168   : > { %5922 = vmatmul.mubr.f32.vlgmr.msra.gmra.mrb[0].mxu0 %v427_v51 }
 0x169   : > { %6288 = vmatpush3.bf16.msra.mxu0 %v6287_v37  ;;  %5932 = vmatprep.mubr.msk.f32.mxu0 %vm6610_vm1, %v6611_v15 }
 0x16a   : > { %6289 = vmatprep.subr.bf16.mxu0 %v6609_v10 }
 0x16d   : > { %6291 = vmatpush3.bf16.msra.mxu0 %v6290_v38 }
 0x16e   : > { %6292 = vmatprep.subr.bf16.mxu0 %v6609_v10 }
 0x170   : > { %5933 = vmatmul.mubr.f32.vlgmr.msra.gmra.mrb[0].mxu0 %v428_v52 }
 0x171   : > { %6294 = vmatpush3.bf16.msra.mxu0 %v6745_v17  ;;  %5943 = vmatprep.mubr.msk.f32.mxu0 %vm6610_vm1, %v6611_v15 }
 0x172   : > { %6295 = vmatprep.subr.bf16.mxu0 %v6609_v10 }
 0x175   : > { %6297 = vmatpush3.bf16.msra.mxu0 %v6748_v22 }
 0x176   : > { %6298 = vmatprep.subr.bf16.mxu0 %v6609_v10 }
 0x178   : > { %5944 = vmatmul.mubr.f32.vlgmr.msra.gmra.mrb[0].mxu0 %v429_v53 }
 0x179   : > { %6300 = vmatpush3.bf16.msra.mxu0 %v6299_v39  ;;  %5954 = vmatprep.mubr.msk.f32.mxu0 %vm6610_vm1, %v6611_v15 }
 0x17a   : > { %6301 = vmatprep.subr.bf16.mxu0 %v6609_v10 }
 0x17d   : > { %6303 = vmatpush3.bf16.msra.mxu0 %v6302_v40 }
 0x17e   : > { %6304 = vmatprep.subr.bf16.mxu0 %v6609_v10 }
 0x180   : > { %5955 = vmatmul.mubr.f32.vlgmr.msra.gmra.mrb[0].mxu0 %v427_v51 }
 0x181   : > { %6306 = vmatpush3.bf16.msra.mxu0 %v6745_v17  ;;  %5965 = vmatprep.mubr.msk.f32.mxu0 %vm6610_vm1, %v6611_v15 }
 0x182   : > { %6307 = vmatprep.subr.bf16.mxu0 %v6609_v10 }
 0x185   : > { %6309 = vmatpush3.bf16.msra.mxu0 %v6748_v22 }
 0x186   : > { %6028 = vmatprep.subr.mxu0 %v6611_v15 }
 0x188   : > { %5966 = vmatmul.mubr.f32.vlgmr.msra.gmra.mrb[0].mxu0 %v427_v51 }
 0x189   : > { %6030 = vmatprep.mubr.msk.f32.mxu0 %vm6610_vm1, %v6611_v15 }
 0x25b   : > { %v839_v57 = vpop.f32.mrb[0].mxu0 }
 0x25c   : > { %v6789_v58 = vadd.f32 %v5730_v56, %v839_v57  ;;  %v5967_v59 = vpop.f32.mrb[1].mxu0 }
 0x25e   : > { %850 = vrot.lane.b32.xlu0 %v6789_v58, %s6612_s24  ;;  %844 = vrot.lane.b32.xlu1 %v6789_v58, %s6613_s25  ;;  %s7248_s25 = scalar_lea.hbm %s7332_s8, %s7334_s22 }
 0x262   : > { %847 = vrot.lane.b32.xlu1 %v6789_v58, %s6614_s26  ;;  %s5630_s26 = sshll.u32 %s7123_s18, 4  ;;  %s5631_s26 = int_to_ptr.vmem [resolvable:$true] %s5630_s26 }
 0x266   : > { %989 = vrot.lane.b32.xlu1 %v6789_v58, %s6615_s10 }
 0x2d0   : > { %v6795_v3 = vpop.permute.xlu0 %850  ;;  %v6797_v4 = vpop.permute.xlu1 %844 }
 0x2d1   : > { %991 = vrot.lane.b32.xlu1 %v6797_v4, %s6615_s10  ;;  %v869_v7 = vcombine.low %v6797_v4, %v6795_v3  ;;  %v870_v8 = vcombine.high %v6797_v4, %v6795_v3 }
 0x2d3   : > { %v877_v14 = vrot.slane %v869_v7, %v6800_v6  ;;  %v884_v16 = vrot.slane %v870_v8, %v6800_v6 }
 0x2d4   : > { %v6806_v9 = vpop.permute.xlu1 %847 }
 0x2d5   : > { %v853_v11 = vcombine.low %v6789_v58, %v6806_v9  ;;  %v854_v12 = vcombine.high %v6789_v58, %v6806_v9  ;;  %993 = vrot.lane.b32.xlu1 %v6806_v9, %s6615_s10 }
 0x2d7   : > { %v861_v17 = vrot.slane %v853_v11, %v6800_v6  ;;  %v868_v18 = vrot.slane %v854_v12, %v6800_v6 }
 0x2d8   : > { %v990_v40 = vpop.permute.xlu1 %989 }
 0x2d9   : > { %v885_v19 = vcombine.low %v861_v17, %v877_v14  ;;  %v886_v20 = vcombine.high %v861_v17, %v877_v14  ;;  %v901_v21 = vcombine.low %v868_v18, %v884_v16  ;;  %v902_v22 = vcombine.high %v868_v18, %v884_v16  ;;  %995 = vrot.lane.b32.xlu1 %v6795_v3, %s6615_s10  ;;  %s5604_s10 = scalar_lea.sflag [#allocation5], %s7099_s13 }
 0x2db   : > { %v893_v23 = vrot.slane %v885_v19, %v6813_v13  ;;  %v900_v24 = vrot.slane %v886_v20, %v6813_v13  ;;  %v909_v25 = vrot.slane %v901_v21, %v6813_v13  ;;  %v916_v26 = vrot.slane %v902_v22, %v6813_v13 }
 0x2dd   : > { %v921_v27 = vcombine.low %v893_v23, %v900_v24  ;;  %v5731_v28 = vcombine.high %v893_v23, %v900_v24  ;;  %v937_v29 = vcombine.low %v909_v25, %v916_v26  ;;  %v5732_v30 = vcombine.high %v909_v25, %v916_v26 }
 0x2df   : > { %v928_v31 = vrot.slane %v921_v27, %v6800_v6  ;;  %v936_v32 = vrot.slane %v5731_v28, %v6800_v6  ;;  %v944_v33 = vrot.slane %v937_v29, %v6800_v6  ;;  %v952_v34 = vrot.slane %v5732_v30, %v6800_v6 }
 0x2e1   : > { %v954_v35 = vcombine.high %v928_v31, %v936_v32  ;;  %v970_v36 = vcombine.high %v944_v33, %v952_v34  ;;  %v953_v41 = vcombine.low %v928_v31, %v936_v32  ;;  %v969_v42 = vcombine.low %v944_v33, %v952_v34 }
 0x2e3   : > { %v6829_v37 = vrot.slane %v954_v35, %v6813_v13  ;;  %v6832_v38 = vrot.slane %v970_v36, %v6813_v13  ;;  %v6837_v44 = vrot.slane %v953_v41, %v6813_v13  ;;  %v6840_v45 = vrot.slane %v969_v42, %v6813_v13 }
 0x2e5   : > { %v988_v39 = vcombine.high %v6829_v37, %v6832_v38  ;;  %v985_v47 = vcombine.low %v6837_v44, %v6840_v45  ;;  %v987_v48 = vcombine.low %v6829_v37, %v6832_v38 }
 0x2e7   : > { %v1287_v54 = vsel %vm1285_vm2, %v985_v47, 0  ;;  %v2191_v55 = vsel %vm1285_vm2, %v987_v48, 0 }
 0x2e8   : > { %v6852_v1 = vand.u32 4294901760, %v1287_v54  ;;  %v6854_v2 = vand.u32 4294901760, %v2191_v55 }
 0x2ea   : > { %v6861_v18 = vsub.f32 %v1287_v54, %v6852_v1  ;;  %v6864_v19 = vsub.f32 %v2191_v55, %v6854_v2 }
 0x2ec   : > { %v1360_v28 = vand.u32 4294901760, %v6861_v18  ;;  %v2264_v29 = vand.u32 4294901760, %v6864_v19 }
 0x2ee   : > { %v1361_v42 = vsub.f32 %v6861_v18, %v1360_v28 }
 0x343   : > { %v992_v43 = vpop.permute.xlu1 %991 }
 0x347   : > { %v994_v46 = vpop.permute.xlu1 %993 }
 0x348   : > { %v1001_v49 = vcombine.low %v990_v40, %v994_v46  ;;  %v1002_v50 = vcombine.high %v990_v40, %v994_v46 }
 0x34a   : > { %v1009_v56 = vrot.slane %v1001_v49, %v6800_v6  ;;  %v1016_v57 = vrot.slane %v1002_v50, %v6800_v6  ;;  %v1362_v50 = vand.u32 4294901760, %v1361_v42 }
 0x34b   : > { %v996_v51 = vpop.permute.xlu1 %995 }
 0x34c   : > { %v1017_v52 = vcombine.low %v992_v43, %v996_v51  ;;  %v1018_v53 = vcombine.high %v992_v43, %v996_v51  ;;  %v2265_v43 = vsub.f32 %v6864_v19, %v2264_v29 }
 0x34e   : > { %v1025_v59 = vrot.slane %v1017_v52, %v6800_v6  ;;  %v1032_v60 = vrot.slane %v1018_v53, %v6800_v6  ;;  %v2266_v51 = vand.u32 4294901760, %v2265_v43 }
 0x350   : > { %v1033_v61 = vcombine.low %v1009_v56, %v1025_v59  ;;  %v1034_v62 = vcombine.high %v1009_v56, %v1025_v59  ;;  %v1049_v63 = vcombine.low %v1016_v57, %v1032_v60  ;;  %v1050_v0 = vcombine.high %v1016_v57, %v1032_v60 }
 0x351   : > { %v986_v59 = vcombine.high %v6837_v44, %v6840_v45 }
 0x352   : > { %v1041_v5 = vrot.slane %v1033_v61, %v6813_v13  ;;  %v1048_v7 = vrot.slane %v1034_v62, %v6813_v13  ;;  %v1057_v8 = vrot.slane %v1049_v63, %v6813_v13  ;;  %v1064_v11 = vrot.slane %v1050_v0, %v6813_v13 }
 0x353   : > { %v1739_v61 = vsel %vm1285_vm2, %v986_v59, 0 }
 0x354   : > { %v1069_v12 = vcombine.low %v1041_v5, %v1048_v7  ;;  %v5733_v14 = vcombine.high %v1041_v5, %v1048_v7  ;;  %v1085_v16 = vcombine.low %v1057_v8, %v1064_v11  ;;  %v5734_v17 = vcombine.high %v1057_v8, %v1064_v11 }
 0x355   : > { %v1810_v63 = vand.u32 4294901760, %v1739_v61 }
 0x356   : > { %v1076_v20 = vrot.slane %v1069_v12, %v6800_v6  ;;  %v1084_v21 = vrot.slane %v5733_v14, %v6800_v6  ;;  %v1092_v22 = vrot.slane %v1085_v16, %v6800_v6  ;;  %v1100_v23 = vrot.slane %v5734_v17, %v6800_v6 }
 0x357   : > { %v1811_v45 = vsub.f32 %v1739_v61, %v1810_v63 }
 0x358   : > { %v1101_v24 = vcombine.low %v1076_v20, %v1084_v21  ;;  %v1102_v25 = vcombine.high %v1076_v20, %v1084_v21  ;;  %v1117_v26 = vcombine.low %v1092_v22, %v1100_v23  ;;  %v1118_v27 = vcombine.high %v1092_v22, %v1100_v23 }
 0x359   : > { %v1812_v5 = vand.u32 4294901760, %v1811_v45 }
 0x35a   : > { %v1109_v30 = vrot.slane %v1101_v24, %v6813_v13  ;;  %v1125_v31 = vrot.slane %v1117_v26, %v6813_v13  ;;  %v6875_v32 = vrot.slane %v1102_v25, %v6813_v13  ;;  %v6878_v33 = vrot.slane %v1118_v27, %v6813_v13 }
 0x35b   : > { %v1813_v8 = vsub.f32 %v1811_v45, %v1812_v5 }
 0x35c   : > { %v1133_v34 = vcombine.low %v1109_v30, %v1125_v31  ;;  %v1135_v35 = vcombine.low %v6875_v32, %v6878_v33  ;;  %v1136_v36 = vcombine.high %v6875_v32, %v6878_v33  ;;  %v1134_v60 = vcombine.high %v1109_v30, %v1125_v31 }
 0x35d   : > { %v1814_v12 = vand.u32 4294901760, %v1813_v8 }
 0x35e   : > { %v1290_v40 = vsel %vm1285_vm2, %v1133_v34, 0  ;;  %v2194_v41 = vsel %vm1285_vm2, %v1135_v35, 0  ;;  %v1742_v62 = vsel %vm1285_vm2, %v1134_v60, 0 }
 0x35f   : > { %v1293_v46 = vand.u32 4294901760, %v1290_v40  ;;  %v2197_v47 = vand.u32 4294901760, %v2194_v41  ;;  %v1745_v44 = vand.u32 4294901760, %v1742_v62 }
 0x361   : > { %5969 = vmatpush3.xpose.msra.mxu1 %v1293_v46  ;;  %v1370_v48 = vsub.f32 %v1290_v40, %v1293_v46  ;;  %6029 = vmatpush3.xpose.msra.mxu0 %v2197_v47  ;;  %v2274_v49 = vsub.f32 %v2194_v41, %v2197_v47  ;;  %v1822_v0 = vsub.f32 %v1742_v62, %v1745_v44 }
 0x362   : > { %5973 = vmatprep.subr.mxu1 %v6611_v15  ;;  %6033 = vmatprep.subr.mxu0 %v6611_v15 }
 0x363   : > { %v1371_v52 = vand.u32 4294901760, %v1370_v48  ;;  %v2275_v53 = vand.u32 4294901760, %v2274_v49  ;;  %v1823_v7 = vand.u32 4294901760, %v1822_v0 }
 0x364   : > { %5971 = vmatmul.mubr.f32.vlgmr.msra.gmra.mrb[0].mxu1 %v1362_v50  ;;  %6031 = vmatmul.mubr.f32.vlgmr.msra.gmra.mrb[2].mxu0 %v2266_v51 }
 0x365   : > { %v1372_v54 = vsub.f32 %v1370_v48, %v1371_v52  ;;  %v2276_v55 = vsub.f32 %v2274_v49, %v2275_v53  ;;  %5975 = vmatprep.mubr.msk.f32.mxu1 %vm6610_vm1, %v6611_v15  ;;  %6035 = vmatprep.mubr.msk.f32.mxu0 %vm6610_vm1, %v6611_v15  ;;  %v1824_v11 = vsub.f32 %v1822_v0, %v1823_v7 }
 0x367   : > { %v1373_v56 = vand.u32 4294901760, %v1372_v54  ;;  %v2277_v57 = vand.u32 4294901760, %v2276_v55  ;;  %v1825_v14 = vand.u32 4294901760, %v1824_v11 }
 0x369   : > { %5974 = vmatpush3.xpose.msra.mxu1 %v1373_v56  ;;  %6034 = vmatpush3.xpose.msra.mxu0 %v2277_v57 }
 0x36a   : > { %5978 = vmatprep.subr.mxu1 %v6611_v15  ;;  %6038 = vmatprep.subr.mxu0 %v6611_v15 }
 0x36c   : > { %5976 = vmatmul.mubr.f32.vlgmr.msra.gmra.mrb[0].mxu1 %v6852_v1  ;;  %6036 = vmatmul.mubr.f32.vlgmr.msra.gmra.mrb[2].mxu0 %v6854_v2 }
 0x36d   : > { %5979 = vmatpush3.xpose.msra.mxu1 %v1370_v48  ;;  %6039 = vmatpush3.xpose.msra.mxu0 %v2274_v49 }
 0x36e   : > { %5980 = vmatprep.mubr.msk.f32.mxu1 %vm6610_vm1, %v6611_v15  ;;  %5983 = vmatprep.subr.mxu1 %v6611_v15 }
 0x36f   : > { %6040 = vmatprep.mubr.msk.f32.mxu0 %vm6610_vm1, %v6611_v15  ;;  %6043 = vmatprep.subr.mxu0 %v6611_v15 }
 0x374   : > { %5981 = vmatmul.mubr.f32.vlgmr.msra.gmra.mrb[0].mxu1 %v6861_v18  ;;  %6041 = vmatmul.mubr.f32.vlgmr.msra.gmra.mrb[2].mxu0 %v6864_v19 }
 0x375   : > { %5984 = vmatpush3.xpose.msra.mxu1 %v1293_v46  ;;  %6044 = vmatpush3.xpose.msra.mxu0 %v2197_v47 }
 0x376   : > { %5985 = vmatprep.mubr.msk.f32.mxu1 %vm6610_vm1, %v6611_v15  ;;  %5988 = vmatprep.subr.mxu1 %v6611_v15 }
 0x377   : > { %6045 = vmatprep.mubr.msk.f32.mxu0 %vm6610_vm1, %v6611_v15  ;;  %6048 = vmatprep.subr.mxu0 %v6611_v15 }
 0x37c   : > { %5986 = vmatmul.mubr.f32.vlgmr.msra.gmra.mrb[0].mxu1 %v1360_v28  ;;  %6046 = vmatmul.mubr.f32.vlgmr.msra.gmra.mrb[2].mxu0 %v2264_v29 }
 0x37d   : > { %5989 = vmatpush3.xpose.msra.mxu1 %v1371_v52  ;;  %6049 = vmatpush3.xpose.msra.mxu0 %v2275_v53 }
 0x37e   : > { %5990 = vmatprep.mubr.msk.f32.mxu1 %vm6610_vm1, %v6611_v15  ;;  %5993 = vmatprep.subr.mxu1 %v6611_v15 }
 0x37f   : > { %6050 = vmatprep.mubr.msk.f32.mxu0 %vm6610_vm1, %v6611_v15  ;;  %6053 = vmatprep.subr.mxu0 %v6611_v15 }
 0x384   : > { %5991 = vmatmul.mubr.f32.vlgmr.msra.gmra.mrb[0].mxu1 %v6852_v1  ;;  %6051 = vmatmul.mubr.f32.vlgmr.msra.gmra.mrb[2].mxu0 %v6854_v2 }
 0x385   : > { %5994 = vmatpush3.xpose.msra.mxu1 %v1293_v46  ;;  %6054 = vmatpush3.xpose.msra.mxu0 %v2197_v47 }
 0x386   : > { %5995 = vmatprep.mubr.msk.f32.mxu1 %vm6610_vm1, %v6611_v15  ;;  %5998 = vmatprep.subr.mxu1 %v6611_v15 }
 0x387   : > { %6055 = vmatprep.mubr.msk.f32.mxu0 %vm6610_vm1, %v6611_v15  ;;  %6088 = vmatprep.subr.mxu0 %v6611_v15 }
 0x38c   : > { %5996 = vmatmul.mubr.f32.vlgmr.msra.gmra.mrb[0].mxu1 %v6852_v1  ;;  %6056 = vmatmul.mubr.f32.vlgmr.msra.gmra.mrb[2].mxu0 %v6854_v2  ;;  %v2643_v1 = vsel %vm1285_vm2, %v988_v39, 0  ;;  %v2646_v2 = vsel %vm1285_vm2, %v1136_v36, 0 }
 0x38d   : > { %5999 = vmatpush3.xpose.msra.mxu1 %v1745_v44  ;;  %6000 = vmatprep.mubr.msk.f32.mxu1 %vm6610_vm1, %v6611_v15  ;;  %v2714_v16 = vand.u32 4294901760, %v2643_v1  ;;  %v2649_v17 = vand.u32 4294901760, %v2646_v2 }
 0x38e   : > { %6003 = vmatprep.subr.mxu1 %v6611_v15  ;;  %6090 = vmatprep.mubr.msk.f32.mxu0 %vm6610_vm1, %v6611_v15 }
 0x38f   : > { %v2715_v18 = vsub.f32 %v2643_v1, %v2714_v16  ;;  %v2726_v19 = vsub.f32 %v2646_v2, %v2649_v17 }
 0x390   : > { %6001 = vmatmul.mubr.f32.vlgmr.msra.gmra.mrb[2].mxu1 %v1814_v12 }
 0x391   : > { %6004 = vmatpush3.xpose.msra.mxu1 %v1825_v14  ;;  %6005 = vmatprep.mubr.msk.f32.mxu1 %vm6610_vm1, %v6611_v15  ;;  %v2716_v37 = vand.u32 4294901760, %v2715_v18  ;;  %v2727_v38 = vand.u32 4294901760, %v2726_v19 }
 0x392   : > { %6008 = vmatprep.subr.mxu1 %v6611_v15 }
 0x393   : > { %v2717_v39 = vsub.f32 %v2715_v18, %v2716_v37  ;;  %v2728_v20 = vsub.f32 %v2726_v19, %v2727_v38 }
 0x395   : > { %v2718_v21 = vand.u32 4294901760, %v2717_v39  ;;  %v2729_v22 = vand.u32 4294901760, %v2728_v20 }
 0x398   : > { %6006 = vmatmul.mubr.f32.vlgmr.msra.gmra.mrb[2].mxu1 %v1810_v63 }
 0x399   : > { %6009 = vmatpush3.xpose.msra.mxu1 %v1822_v0  ;;  %6010 = vmatprep.mubr.msk.f32.mxu1 %vm6610_vm1, %v6611_v15 }
 0x39a   : > { %6013 = vmatprep.subr.mxu1 %v6611_v15 }
 0x3a0   : > { %6011 = vmatmul.mubr.f32.vlgmr.msra.gmra.mrb[2].mxu1 %v1811_v45 }
 0x3a1   : > { %6014 = vmatpush3.xpose.msra.mxu1 %v1745_v44  ;;  %6015 = vmatprep.mubr.msk.f32.mxu1 %vm6610_vm1, %v6611_v15 }
 0x3a2   : > { %6018 = vmatprep.subr.mxu1 %v6611_v15 }
 0x3a8   : > { %6016 = vmatmul.mubr.f32.vlgmr.msra.gmra.mrb[2].mxu1 %v1812_v5 }
 0x3a9   : > { %6019 = vmatpush3.xpose.msra.mxu1 %v1823_v7  ;;  %6020 = vmatprep.mubr.msk.f32.mxu1 %vm6610_vm1, %v6611_v15 }
 0x3aa   : > { %6023 = vmatprep.subr.mxu1 %v6611_v15 }
 0x3b0   : > { %6021 = vmatmul.mubr.f32.vlgmr.msra.gmra.mrb[2].mxu1 %v1810_v63 }
 0x3b1   : > { %6024 = vmatpush3.xpose.msra.mxu1 %v1745_v44  ;;  %6025 = vmatprep.mubr.msk.f32.mxu1 %vm6610_vm1, %v6611_v15 }
 0x3b2   : > { %6058 = vmatprep.subr.mxu1 %v6611_v15 }
 0x3b8   : > { %6026 = vmatmul.mubr.f32.vlgmr.msra.gmra.mrb[2].mxu1 %v1810_v63 }
 0x3b9   : > { %6059 = vmatpush3.xpose.msra.mxu1 %v2649_v17  ;;  %6060 = vmatprep.mubr.msk.f32.mxu1 %vm6610_vm1, %v6611_v15 }
 0x3ba   : > { %6063 = vmatprep.subr.mxu1 %v6611_v15 }
 0x3bc   : > { %6061 = vmatmul.mubr.f32.vlgmr.msra.gmra.mrb[4].mxu1 %v2718_v21 }
 0x3bd   : > { %6064 = vmatpush3.xpose.msra.mxu1 %v2729_v22  ;;  %6065 = vmatprep.mubr.msk.f32.mxu1 %vm6610_vm1, %v6611_v15 }
 0x3be   : > { %6068 = vmatprep.subr.mxu1 %v6611_v15 }
 0x3c4   : > { %6066 = vmatmul.mubr.f32.vlgmr.msra.gmra.mrb[4].mxu1 %v2714_v16 }
 0x3c5   : > { %6069 = vmatpush3.xpose.msra.mxu1 %v2726_v19  ;;  %6070 = vmatprep.mubr.msk.f32.mxu1 %vm6610_vm1, %v6611_v15 }
 0x3c6   : > { %6073 = vmatprep.subr.mxu1 %v6611_v15 }
 0x3cc   : > { %6071 = vmatmul.mubr.f32.vlgmr.msra.gmra.mrb[4].mxu1 %v2715_v18 }
 0x3cd   : > { %6074 = vmatpush3.xpose.msra.mxu1 %v2649_v17  ;;  %6075 = vmatprep.mubr.msk.f32.mxu1 %vm6610_vm1, %v6611_v15 }
 0x3ce   : > { %6078 = vmatprep.subr.mxu1 %v6611_v15 }
 0x3d4   : > { %6076 = vmatmul.mubr.f32.vlgmr.msra.gmra.mrb[4].mxu1 %v2716_v37 }
 0x3d5   : > { %6079 = vmatpush3.xpose.msra.mxu1 %v2727_v38  ;;  %6080 = vmatprep.mubr.msk.f32.mxu1 %vm6610_vm1, %v6611_v15 }
 0x3d6   : > { %6083 = vmatprep.subr.mxu1 %v6611_v15 }
 0x3dc   : > { %6081 = vmatmul.mubr.f32.vlgmr.msra.gmra.mrb[4].mxu1 %v2714_v16 }
 0x3dd   : > { %6084 = vmatpush3.xpose.msra.mxu1 %v2649_v17  ;;  %6085 = vmatprep.mubr.msk.f32.mxu1 %vm6610_vm1, %v6611_v15 }
 0x3de   : > { %6118 = vmatprep.subr.mxu1 %v6611_v15 }
 0x3e4   : > { %6086 = vmatmul.mubr.f32.vlgmr.msra.gmra.mrb[4].mxu1 %v2714_v16 }
 0x3e5   : > { %6120 = vmatprep.mubr.msk.f32.mxu1 %vm6610_vm1, %v6611_v15 }
 0x45f   : > { %v1734_v23 = vpop.f32.mrb[0].mxu1  ;;  %v2638_v24 = vpop.f32.mrb[2].mxu0 }
 0x460   : > { %v5997_v25 = vpop.f32.mrb[1].mxu1  ;;  %v6057_v26 = vpop.f32.mrb[3].mxu0  ;;  %v3094_v27 = vsel %vm1285_vm2, %v1734_v23, -inf  ;;  %v3100_v28 = vsel %vm1285_vm2, %v2638_v24, -inf }
 0x461   : > { %3095 = vmax.xlane.f32.xlu1 %v3094_v27 }
 0x465   : > { %3101 = vmax.xlane.f32.xlu1 %v3100_v28 }
 0x476   : > { %1137 = vrot.lane.b32.xlu1 %v6789_v58, %s6618_s12 }
 0x48b   : > { %v2186_v29 = vpop.f32.mrb[2].mxu1 }
 0x48c   : > { %v6027_v30 = vpop.f32.mrb[3].mxu1  ;;  %v3097_v31 = vsel %vm1285_vm2, %v2186_v29, -inf }
 0x48d   : > { %3098 = vmax.xlane.f32.xlu0 %v3097_v31 }
 0x4b7   : > { %v3090_v32 = vpop.f32.mrb[4].mxu1 }
 0x4b8   : > { %v6087_v33 = vpop.f32.mrb[5].mxu1  ;;  %v3103_v34 = vsel %vm1285_vm2, %v3090_v32, -inf }
 0x4b9   : > { %3104 = vmax.xlane.f32.xlu0 %v3103_v34 }
 0x4ee   : > { %v3096_v35 = vpop.xlane.xlu1 %3095 }
 0x4ef   : > { %v3106_v36 = vsub.f32 %v1734_v23, %v3096_v35 }
 0x4f1   : > { %v3110_v40 = vmul.f32 1.442695, %v3106_v36 }
 0x4f2   : > { %v3102_v50 = vpop.xlane.xlu1 %3101 }
 0x4f3   : > { %6496 = vpow2.f32 %v3110_v40  ;;  %v3108_v53 = vsub.f32 %v2638_v24, %v3102_v50 }
 0x4f5   : > { %v3114_v54 = vmul.f32 1.442695, %v3108_v53 }
 0x4fd   : > { %v6497_v41 = vpop.eup %6496 }
 0x4fe   : > { %v3118_v42 = vsel %vm1285_vm2, %v6497_v41, 0.0 }
 0x4ff   : > { %3119 = vadd.xlane.f32.xlu1 %v3118_v42 }
 0x510   : > { %1141 = vrot.lane.b32.xlu1 %v6806_v9, %s6618_s12 }
 0x514   : > { %1143 = vrot.lane.b32.xlu1 %v6795_v3, %s6618_s12 }
 0x51a   : > { %v3099_v58 = vpop.xlane.xlu0 %3098 }
 0x51b   : > { %v3107_v43 = vsub.f32 %v2186_v29, %v3099_v58 }
 0x51d   : > { %v3112_v46 = vmul.f32 1.442695, %v3107_v43 }
 0x51f   : > { %6498 = vpow2.f32 %v3112_v46 }
 0x529   : > { %v6499_v47 = vpop.eup %6498 }
 0x52a   : > { %v3121_v48 = vsel %vm1285_vm2, %v6499_v47, 0.0 }
 0x52b   : > { %3122 = vadd.xlane.f32.xlu0 %v3121_v48 }
 0x541   : > { %1139 = vrot.lane.b32.xlu0 %v6797_v4, %s6618_s12  ;;  %v1138_v4 = vpop.permute.xlu1 %1137  ;;  %s6619_s12 = smov 16  }
 0x546   : > { %v3105_v49 = vpop.xlane.xlu0 %3104 }
 0x547   : > { %v3109_v51 = vsub.f32 %v3090_v32, %v3105_v49 }
 0x549   : > { %v3116_v52 = vmul.f32 1.442695, %v3109_v51 }
 0x54b   : > { %6500 = vpow2.f32 %v3116_v52 }
 0x54c   : > { %6502 = vpow2.f32 %v3114_v54 }
 0x555   : > { %v6990_v9 = vpop.eup %6500 }
 0x556   : > { %v3127_v3 = vsel %vm1285_vm2, %v6990_v9, 0.0  ;;  %v6994_v55 = vpop.eup %6502 }
 0x557   : > { %3128 = vadd.xlane.f32.xlu1 %v3127_v3  ;;  %v3124_v56 = vsel %vm1285_vm2, %v6994_v55, 0.0 }
 0x560   : > { %3125 = vadd.xlane.f32.xlu0 %v3124_v56 }
 0x58c   : > { %v3120_v57 = vpop.xlane.xlu1 %3119 }
 0x58d   : > { %6504 = vrcp.f32 %v3120_v57 }
 0x590   : > { %v1142_v60 = vpop.permute.xlu1 %1141 }
 0x591   : > { %v1149_v63 = vcombine.low %v1138_v4, %v1142_v60  ;;  %v1150_v44 = vcombine.high %v1138_v4, %v1142_v60 }
 0x593   : > { %v1157_v11 = vrot.slane %v1149_v63, %v6800_v6  ;;  %v1164_v12 = vrot.slane %v1150_v44, %v6800_v6 }
 0x594   : > { %v1144_v45 = vpop.permute.xlu1 %1143 }
 0x597   : > { %v6505_v59 = vpop.eup %6504 }
 0x598   : > { %v6998_v62 = vmul.f32 %v6505_v59, %v6497_v41 }
 0x59a   : > { %v3139_v8 = vsel %vm1285_vm2, %v6998_v62, 0 }
 0x59b   : > { %v7006_v2 = vand.u32 4294901760, %v3139_v8 }
 0x59d   : > { %v7015_v23 = vsub.f32 %v3139_v8, %v7006_v2 }
 0x59f   : > { %v3209_v33 = vand.u32 4294901760, %v7015_v23 }
 0x5a1   : > { %v3210_v58 = vsub.f32 %v7015_v23, %v3209_v33 }
 0x5a3   : > { %v3211_v51 = vand.u32 4294901760, %v3210_v58 }
 0x5b8   : > { %v3123_v61 = vpop.xlane.xlu0 %3122 }
 0x5b9   : > { %6506 = vrcp.f32 %v3123_v61 }
 0x5bc   : > { %v1140_v0 = vpop.permute.xlu0 %1139 }
 0x5bd   : > { %v1165_v5 = vcombine.low %v1140_v0, %v1144_v45  ;;  %v1166_v7 = vcombine.high %v1140_v0, %v1144_v45 }
 0x5bf   : > { %v1173_v14 = vrot.slane %v1165_v5, %v6800_v6  ;;  %v1180_v1 = vrot.slane %v1166_v7, %v6800_v6 }
 0x5c1   : > { %v1181_v16 = vcombine.low %v1157_v11, %v1173_v14  ;;  %v1182_v17 = vcombine.high %v1157_v11, %v1173_v14  ;;  %v1197_v18 = vcombine.low %v1164_v12, %v1180_v1  ;;  %v1198_v19 = vcombine.high %v1164_v12, %v1180_v1 }
 0x5c3   : > { %v6507_v37 = vpop.eup %6506  ;;  %v1189_v38 = vrot.slane %v1181_v16, %v6813_v13  ;;  %v1196_v39 = vrot.slane %v1182_v17, %v6813_v13  ;;  %v1205_v20 = vrot.slane %v1197_v18, %v6813_v13  ;;  %v1212_v21 = vrot.slane %v1198_v19, %v6813_v13 }
 0x5c4   : > { %v7012_v22 = vmul.f32 %v6507_v37, %v6499_v47 }
 0x5c5   : > { %v1217_v24 = vcombine.low %v1189_v38, %v1196_v39  ;;  %v5735_v25 = vcombine.high %v1189_v38, %v1196_v39  ;;  %v1233_v26 = vcombine.low %v1205_v20, %v1212_v21  ;;  %v5736_v27 = vcombine.high %v1205_v20, %v1212_v21 }
 0x5c6   : > { %v3588_v28 = vsel %vm1285_vm2, %v7012_v22, 0  ;;  %v5589_v38 = vsel %vm1285_vm2, %v7012_v22, 0.0 }
 0x5c7   : > { %v1224_v29 = vrot.slane %v1217_v24, %v6800_v6  ;;  %v1232_v30 = vrot.slane %v5735_v25, %v6800_v6  ;;  %v1240_v31 = vrot.slane %v1233_v26, %v6800_v6  ;;  %v1248_v32 = vrot.slane %v5736_v27, %v6800_v6 }
 0x5c8   : > { %v7024_v34 = vand.u32 4294901760, %v3588_v28  ;;  %v5588_v24 = vsel %vm1285_vm2, %v6998_v62, 0.0 }
 0x5c9   : > { %v1249_v35 = vcombine.low %v1224_v29, %v1232_v30  ;;  %v1265_v36 = vcombine.low %v1240_v31, %v1248_v32  ;;  %v1250_v61 = vcombine.high %v1224_v29, %v1232_v30  ;;  %v1266_v63 = vcombine.high %v1240_v31, %v1248_v32 }
 0x5ca   : > { %v3657_v40 = vsub.f32 %v3588_v28, %v7024_v34  ;;  %v5590_v26 = vadd.f32 %v5589_v38, %v5588_v24 }
 0x5cb   : > { %v1257_v41 = vrot.slane %v1249_v35, %v6813_v13  ;;  %v1273_v42 = vrot.slane %v1265_v36, %v6813_v13  ;;  %v1264_v45 = vrot.slane %v1250_v61, %v6813_v13  ;;  %v1280_v0 = vrot.slane %v1266_v63, %v6813_v13 }
 0x5cc   : > { %v3658_v43 = vand.u32 4294901760, %v3657_v40 }
 0x5cd   : > { %v1281_v46 = vcombine.low %v1257_v41, %v1273_v42  ;;  %v1282_v47 = vcombine.high %v1257_v41, %v1273_v42  ;;  %v1284_v5 = vcombine.high %v1264_v45, %v1280_v0  ;;  %v1283_v14 = vcombine.low %v1264_v45, %v1280_v0 }
 0x5ce   : > { %v3659_v48 = vsub.f32 %v3657_v40, %v3658_v43 }
 0x5cf   : > { %v7030_v49 = vand.u32 4294901760, %v1281_v46  ;;  %v7032_v50 = vand.u32 4294901760, %v1282_v47  ;;  %v7071_v8 = vand.u32 4294901760, %v1284_v5 }
 0x5d0   : > { %v3660_v52 = vand.u32 4294901760, %v3659_v48 }
 0x5d1   : > { %6089 = vmatpush3.msra.mxu0 %v7030_v49  ;;  %v3219_v53 = vsub.f32 %v1281_v46, %v7030_v49  ;;  %6119 = vmatpush3.msra.mxu1 %v7032_v50  ;;  %v3668_v54 = vsub.f32 %v1282_v47, %v7032_v50  ;;  %v7076_v1 = vsub.f32 %v1284_v5, %v7071_v8 }
 0x5d2   : > { %6091 = vmatmul.mubr.f32.vlgmr.msra.gmra.mrb[4].mxu0 %v3211_v51  ;;  %6121 = vmatmul.mubr.f32.vlgmr.msra.gmra.mrb[6].mxu1 %v3660_v52  ;;  %v5087_v51 = vld [vmem:[%s7329_s5] sm:$0xff]  ;;  %v5088_v52 = vld [vmem:[%s7329_s5 + $0x8] sm:$0xff] }
 0x5d3   : > { %6093 = vmatprep.subr.mxu0 %v6611_v15  ;;  %6123 = vmatprep.subr.mxu1 %v6611_v15  ;;  %v3220_v3 = vand.u32 4294901760, %v3219_v53  ;;  %v3669_v56 = vand.u32 4294901760, %v3668_v54  ;;  %v4567_v19 = vand.u32 4294901760, %v7076_v1 }
 0x5d4   : > { %6095 = vmatprep.mubr.msk.f32.mxu0 %vm6610_vm1, %v6611_v15  ;;  %6125 = vmatprep.mubr.msk.f32.mxu1 %vm6610_vm1, %v6611_v15 }
 0x5d5   : > { %v3221_v4 = vsub.f32 %v3219_v53, %v3220_v3  ;;  %v3670_v57 = vsub.f32 %v3668_v54, %v3669_v56  ;;  %v4568_v25 = vsub.f32 %v7076_v1, %v4567_v19 }
 0x5d7   : > { %v3222_v59 = vand.u32 4294901760, %v3221_v4  ;;  %v3671_v60 = vand.u32 4294901760, %v3670_v57  ;;  %v4569_v30 = vand.u32 4294901760, %v4568_v25  ;;  %v5089_v4 = vld [vmem:[%s7329_s5 + $0x10] sm:$0xff]  ;;  %v5090_v57 = vld [vmem:[%s7329_s5 + $0x18] sm:$0xff] }
 0x5d8   : > { %v5108_v63 = vand.u32 4294901760, %v5089_v4 }
 0x5d9   : > { %6094 = vmatpush3.msra.mxu0 %v3222_v59  ;;  %6124 = vmatpush3.msra.mxu1 %v3671_v60 }
 0x5da   : > { %6096 = vmatmul.mubr.f32.vlgmr.msra.gmra.mrb[4].mxu0 %v7006_v2  ;;  %6098 = vmatprep.subr.mxu0 %v6611_v15 }
 0x5db   : > { %6126 = vmatmul.mubr.f32.vlgmr.msra.gmra.mrb[6].mxu1 %v7024_v34  ;;  %6128 = vmatprep.subr.mxu1 %v6611_v15 }
 0x5dc   : > { %6099 = vmatpush3.msra.mxu0 %v3219_v53  ;;  %6129 = vmatpush3.msra.mxu1 %v3668_v54  ;;  %v5102_v53 = vand.u32 4294901760, %v5087_v51  ;;  %v5105_v54 = vand.u32 4294901760, %v5088_v52 }
 0x5dd   : > { %6100 = vmatprep.mubr.msk.f32.mxu0 %vm6610_vm1, %v6611_v15  ;;  %6103 = vmatprep.subr.mxu0 %v6611_v15 }
 0x5de   : > { %6130 = vmatprep.mubr.msk.f32.mxu1 %vm6610_vm1, %v6611_v15  ;;  %6133 = vmatprep.subr.mxu1 %v6611_v15 }
 0x5e2   : > { %6101 = vmatmul.mubr.f32.vlgmr.msra.gmra.mrb[4].mxu0 %v7015_v23 }
 0x5e3   : > { %6104 = vmatpush3.msra.mxu0 %v7030_v49  ;;  %6131 = vmatmul.mubr.f32.vlgmr.msra.gmra.mrb[6].mxu1 %v3657_v40 }
 0x5e4   : > { %6134 = vmatpush3.msra.mxu1 %v7032_v50  ;;  %v3129_v44 = vpop.xlane.xlu1 %3128  ;;  %6105 = vmatprep.mubr.msk.f32.mxu0 %vm6610_vm1, %v6611_v15 }
 0x5e5   : > { %6508 = vrcp.f32 %v3129_v44  ;;  %6108 = vmatprep.subr.mxu0 %v6611_v15  ;;  %6135 = vmatprep.mubr.msk.f32.mxu1 %vm6610_vm1, %v6611_v15  ;;  %v5111_v44 = vand.u32 4294901760, %v5090_v57 }
 0x5e6   : > { %6138 = vmatprep.subr.mxu1 %v6611_v15 }
 0x5ea   : > { %6106 = vmatmul.mubr.f32.vlgmr.msra.gmra.mrb[4].mxu0 %v3209_v33 }
 0x5eb   : > { %6109 = vmatpush3.msra.mxu0 %v3220_v3  ;;  %6136 = vmatmul.mubr.f32.vlgmr.msra.gmra.mrb[6].mxu1 %v3658_v43  ;;  %v7172_v3 = vsub.f32 %v5087_v51, %v5102_v53 }
 0x5ec   : > { %6139 = vmatpush3.msra.mxu1 %v3669_v56  ;;  %6110 = vmatprep.mubr.msk.f32.mxu0 %vm6610_vm1, %v6611_v15  ;;  %v7174_v56 = vsub.f32 %v5088_v52, %v5105_v54 }
 0x5ed   : > { %v3126_v7 = vpop.xlane.xlu0 %3125  ;;  %6113 = vmatprep.subr.mxu0 %v6611_v15  ;;  %6140 = vmatprep.mubr.msk.f32.mxu1 %vm6610_vm1, %v6611_v15  ;;  %v5183_v60 = vand.u32 4294901760, %v7172_v3 }
 0x5ee   : > { %6510 = vrcp.f32 %v3126_v7  ;;  %6143 = vmatprep.subr.mxu1 %v6611_v15  ;;  %v5190_v61 = vand.u32 4294901760, %v7174_v56 }
 0x5ef   : > { %v6509_v11 = vpop.eup %6508  ;;  %v5184_v7 = vsub.f32 %v7172_v3, %v5183_v60 }
 0x5f0   : > { %v3137_v12 = vmul.f32 %v6509_v11, %v6990_v9  ;;  %v7089_v9 = vand.u32 4294901760, %v1283_v14  ;;  %v7190_v11 = vsub.f32 %v5089_v4, %v5108_v63 }
 0x5f2   : > { %6111 = vmatmul.mubr.f32.vlgmr.msra.gmra.mrb[4].mxu0 %v7006_v2  ;;  %v4486_v16 = vsel %vm1285_vm2, %v3137_v12, 0  ;;  %v4117_v21 = vsub.f32 %v1283_v14, %v7089_v9  ;;  %v5593_v29 = vsel %vm1285_vm2, %v3137_v12, 0.0  ;;  %v7192_v12 = vsub.f32 %v5090_v57, %v5111_v44 }
 0x5f3   : > { %6114 = vmatpush3.msra.mxu0 %v7030_v49  ;;  %6141 = vmatmul.mubr.f32.vlgmr.msra.gmra.mrb[6].mxu1 %v7024_v34  ;;  %v7081_v17 = vand.u32 4294901760, %v4486_v16 }
 0x5f4   : > { %6144 = vmatpush3.msra.mxu1 %v7032_v50  ;;  %6115 = vmatprep.mubr.msk.f32.mxu0 %vm6610_vm1, %v6611_v15  ;;  %v4118_v28 = vand.u32 4294901760, %v4117_v21 }
 0x5f5   : > { %6145 = vmatprep.mubr.msk.f32.mxu1 %vm6610_vm1, %v6611_v15  ;;  %6148 = vmatprep.subr.mxu0 %v6611_v15  ;;  %v4555_v18 = vsub.f32 %v4486_v16, %v7081_v17 }
 0x5f6   : > { %6178 = vmatprep.subr.mxu1 %v6611_v15  ;;  %v4119_v35 = vsub.f32 %v4117_v21, %v4118_v28 }
 0x5f7   : > { %v4556_v37 = vand.u32 4294901760, %v4555_v18 }
 0x5f8   : > { %v6511_v39 = vpop.eup %6510  ;;  %v4120_v41 = vand.u32 4294901760, %v4119_v35 }
 0x5f9   : > { %v3135_v20 = vmul.f32 %v6511_v39, %v6994_v55  ;;  %v4557_v23 = vsub.f32 %v4555_v18, %v4556_v37 }
 0x5fa   : > { %6116 = vmatmul.mubr.f32.vlgmr.msra.gmra.mrb[4].mxu0 %v7006_v2 }
 0x5fb   : > { %6146 = vmatmul.mubr.f32.vlgmr.msra.gmra.mrb[6].mxu1 %v7024_v34  ;;  %6149 = vmatpush3.msra.mxu0 %v7089_v9  ;;  %v4558_v22 = vand.u32 4294901760, %v4557_v23  ;;  %v4037_v55 = vsel %vm1285_vm2, %v3135_v20, 0  ;;  %v5591_v27 = vsel %vm1285_vm2, %v3135_v20, 0.0 }
 0x5fc   : > { %6179 = vmatpush3.msra.mxu1 %v7071_v8  ;;  %6180 = vmatprep.mubr.msk.f32.mxu1 %vm6610_vm1, %v6611_v15  ;;  %v4105_v62 = vand.u32 4294901760, %v4037_v55  ;;  %v5592_v2 = vadd.f32 %v5591_v27, %v5590_v26 }
 0x5fd   : > { %6183 = vmatprep.subr.mxu1 %v6611_v15  ;;  %6150 = vmatprep.mubr.msk.f32.mxu0 %vm6610_vm1, %v6611_v15 }
 0x5fe   : > { %6153 = vmatprep.subr.mxu0 %v6611_v15  ;;  %v4106_v31 = vsub.f32 %v4037_v55, %v4105_v62  ;;  %v5594_v32 = vadd.f32 %v5593_v29, %v5592_v2 }
 0x5ff   : > { %6181 = vmatmul.mubr.f32.vlgmr.msra.gmra.mrb[8].mxu1 %v4558_v22 }
 0x600   : > { %6184 = vmatpush3.msra.mxu1 %v4569_v30  ;;  %6185 = vmatprep.mubr.msk.f32.mxu1 %vm6610_vm1, %v6611_v15  ;;  %v4107_v33 = vand.u32 4294901760, %v4106_v31  ;;  %v5596_v34 = vmul.f32 0.25, %v5594_v32 }
 0x601   : > { %6188 = vmatprep.subr.mxu1 %v6611_v15 }
 0x602   : > { %v4108_v36 = vsub.f32 %v4106_v31, %v4107_v33  ;;  %5597 = vst.msk [vmem:[%s7123_s18] sm:$0xff] %vm1285_vm2, %v5596_v34 }
 0x604   : > { %v4109_v40 = vand.u32 4294901760, %v4108_v36 }
 0x606   : > { %6151 = vmatmul.mubr.f32.vlgmr.msra.gmra.mrb[6].mxu0 %v4109_v40 }
 0x607   : > { %6154 = vmatpush3.msra.mxu0 %v4120_v41  ;;  %6186 = vmatmul.mubr.f32.vlgmr.msra.gmra.mrb[8].mxu1 %v7081_v17 }
 0x608   : > { %6189 = vmatpush3.msra.mxu1 %v7076_v1  ;;  %6155 = vmatprep.mubr.msk.f32.mxu0 %vm6610_vm1, %v6611_v15 }
 0x609   : > { %6158 = vmatprep.subr.mxu0 %v6611_v15  ;;  %6190 = vmatprep.mubr.msk.f32.mxu1 %vm6610_vm1, %v6611_v15 }
 0x60a   : > { %6193 = vmatprep.subr.mxu1 %v6611_v15 }
 0x60e   : > { %6156 = vmatmul.mubr.f32.vlgmr.msra.gmra.mrb[6].mxu0 %v4105_v62 }
 0x60f   : > { %6159 = vmatpush3.msra.mxu0 %v4117_v21  ;;  %6191 = vmatmul.mubr.f32.vlgmr.msra.gmra.mrb[8].mxu1 %v4555_v18 }
 0x610   : > { %6194 = vmatpush3.msra.mxu1 %v7071_v8  ;;  %6160 = vmatprep.mubr.msk.f32.mxu0 %vm6610_vm1, %v6611_v15 }
 0x611   : > { %6163 = vmatprep.subr.mxu0 %v6611_v15  ;;  %6195 = vmatprep.mubr.msk.f32.mxu1 %vm6610_vm1, %v6611_v15 }
 0x612   : > { %6198 = vmatprep.subr.mxu1 %v6611_v15 }
 0x616   : > { %6161 = vmatmul.mubr.f32.vlgmr.msra.gmra.mrb[6].mxu0 %v4106_v31 }
 0x617   : > { %6164 = vmatpush3.msra.mxu0 %v7089_v9  ;;  %6196 = vmatmul.mubr.f32.vlgmr.msra.gmra.mrb[8].mxu1 %v4556_v37  ;;  %v5204_v37 = vand.u32 4294901760, %v7192_v12 }
 0x618   : > { %6199 = vmatpush3.msra.mxu1 %v4567_v19  ;;  %6165 = vmatprep.mubr.msk.f32.mxu0 %vm6610_vm1, %v6611_v15  ;;  %v5197_v19 = vand.u32 4294901760, %v7190_v11 }
 0x619   : > { %6168 = vmatprep.subr.mxu0 %v6611_v15  ;;  %6200 = vmatprep.mubr.msk.f32.mxu1 %vm6610_vm1, %v6611_v15 }
 0x61a   : > { %6203 = vmatprep.subr.mxu1 %v6611_v15  ;;  %v5198_v24 = vsub.f32 %v7190_v11, %v5197_v19  ;;  %v6338_v57 = vpack.c.bf16 %v5204_v37, %v5197_v19 }
 0x61c   : > { %v5199_v27 = vand.u32 4294901760, %v5198_v24 }
 0x61e   : > { %6166 = vmatmul.mubr.f32.vlgmr.msra.gmra.mrb[6].mxu0 %v4107_v33 }
 0x61f   : > { %6169 = vmatpush3.msra.mxu0 %v4118_v28  ;;  %6201 = vmatmul.mubr.f32.vlgmr.msra.gmra.mrb[8].mxu1 %v7081_v17 }
 0x620   : > { %6204 = vmatpush3.msra.mxu1 %v7071_v8  ;;  %6170 = vmatprep.mubr.msk.f32.mxu0 %vm6610_vm1, %v6611_v15  ;;  %v5191_v8 = vsub.f32 %v7174_v56, %v5190_v61 }
 0x621   : > { %6173 = vmatprep.subr.mxu0 %v6611_v15  ;;  %6205 = vmatprep.mubr.msk.f32.mxu1 %vm6610_vm1, %v6611_v15 }
 0x622   : > { %6316 = vmatprep.subr.bf16.mxu1 %v6609_v10  ;;  %v5192_v18 = vand.u32 4294901760, %v5191_v8 }
 0x626   : > { %6171 = vmatmul.mubr.f32.vlgmr.msra.gmra.mrb[6].mxu0 %v4105_v62 }
 0x627   : > { %6174 = vmatpush3.msra.mxu0 %v7089_v9  ;;  %6206 = vmatmul.mubr.f32.vlgmr.msra.gmra.mrb[8].mxu1 %v7081_v17  ;;  %v5185_v9 = vand.u32 4294901760, %v5184_v7 }
 0x628   : > { %6175 = vmatprep.mubr.msk.f32.mxu0 %vm6610_vm1, %v6611_v15  ;;  %6310 = vmatprep.subr.bf16.mxu0 %v6609_v10 }
 0x629   : > { %6227 = vmatprep.mubr.msk.f32.mxu1 %vm6610_vm1, %v6611_v15  ;;  %v6317_v23 = vpack.c.bf16 %v5192_v18, %v5185_v9 }
 0x62b   : > { %6318 = vmatpush3.bf16.msra.mxu1 %v6317_v23 }
 0x62c   : > { %6319 = vmatprep.subr.bf16.mxu1 %v6609_v10 }
 0x62e   : > { %6176 = vmatmul.mubr.f32.vlgmr.msra.gmra.mrb[6].mxu0 %v4105_v62  ;;  %v5205_v62 = vsub.f32 %v7192_v12, %v5204_v37 }
 0x62f   : > { %6216 = vmatprep.mubr.msk.f32.mxu0 %vm6610_vm1, %v6611_v15 }
 0x630   : > { %v5206_v31 = vand.u32 4294901760, %v5205_v62 }
 0x632   : > { %v6320_v36 = vpack.c.bf16 %v5206_v31, %v5199_v27 }
 0x634   : > { %6321 = vmatpush3.bf16.msra.mxu1 %v6320_v36 }
 0x635   : > { %6328 = vmatprep.subr.bf16.mxu1 %v6609_v10 }
 0x6cd   : > { %v3583_v42 = vpop.f32.mrb[4].mxu0 }
 0x6ce   : > { %v4032_v58 = vpop.f32.mrb[6].mxu1  ;;  %v6117_v43 = vpop.f32.mrb[5].mxu0 }
 0x6cf   : > { %v6147_v46 = vpop.f32.mrb[7].mxu1  ;;  %v6311_v43 = vpack.c.bf16 %v5105_v54, %v5102_v53  ;;  %v6326_v53 = vpack.c.bf16 %v7192_v12, %v7190_v11  ;;  %v6335_v54 = vpack.c.bf16 %v5190_v61, %v5183_v60 }
 0x6d1   : > { %6312 = vmatpush3.bf16.msra.mxu0 %v6311_v43 }
 0x6d2   : > { %6313 = vmatprep.subr.bf16.mxu0 %v6609_v10 }
 0x6fa   : > { %v4930_v47 = vpop.f32.mrb[8].mxu1 }
 0x6fb   : > { %v4950_v48 = vcombine.low %v4032_v58, %v4930_v47  ;;  %v4951_v49 = vcombine.high %v4032_v58, %v4930_v47  ;;  %v6207_v50 = vpop.f32.mrb[9].mxu1 }
 0x6fc   : > { %v6314_v50 = vpack.c.bf16 %v5111_v44, %v5108_v63 }
 0x6fd   : > { %v4958_v14 = vrot.slane %v4950_v48, %v6800_v6  ;;  %v4965_v1 = vrot.slane %v4951_v49, %v6800_v6 }
 0x6fe   : > { %6315 = vmatpush3.bf16.msra.mxu0 %v6314_v50 }
 0x6ff   : > { %6322 = vmatprep.subr.bf16.mxu0 %v6609_v10 }
 0x701   : > { %v4481_v59 = vpop.f32.mrb[6].mxu0 }
 0x702   : > { %v4934_v45 = vcombine.low %v3583_v42, %v4481_v59  ;;  %v4935_v0 = vcombine.high %v3583_v42, %v4481_v59  ;;  %v6177_v5 = vpop.f32.mrb[7].mxu0 }
 0x704   : > { %v4942_v16 = vrot.slane %v4934_v45, %v6800_v6  ;;  %v4949_v17 = vrot.slane %v4935_v0, %v6800_v6 }
 0x706   : > { %v4966_v38 = vcombine.low %v4942_v16, %v4958_v14  ;;  %v4967_v39 = vcombine.high %v4942_v16, %v4958_v14  ;;  %v4982_v20 = vcombine.low %v4949_v17, %v4965_v1  ;;  %v4983_v21 = vcombine.high %v4949_v17, %v4965_v1 }
 0x708   : > { %v4974_v25 = vrot.slane %v4966_v38, %v6813_v13  ;;  %v4981_v26 = vrot.slane %v4967_v39, %v6813_v13  ;;  %v4990_v22 = vrot.slane %v4982_v20, %v6813_v13  ;;  %v4997_v55 = vrot.slane %v4983_v21, %v6813_v13 }
 0x70a   : > { %v5002_v2 = vcombine.low %v4974_v25, %v4981_v26  ;;  %v5737_v28 = vcombine.high %v4974_v25, %v4981_v26  ;;  %v5018_v29 = vcombine.low %v4990_v22, %v4997_v55  ;;  %v5738_v30 = vcombine.high %v4990_v22, %v4997_v55 }
 0x70c   : > { %v5009_v32 = vrot.slane %v5002_v2, %v6800_v6  ;;  %v5017_v33 = vrot.slane %v5737_v28, %v6800_v6  ;;  %v5025_v34 = vrot.slane %v5018_v29, %v6800_v6  ;;  %v5033_v35 = vrot.slane %v5738_v30, %v6800_v6 }
 0x70e   : > { %v5035_v40 = vcombine.high %v5009_v32, %v5017_v33  ;;  %v5051_v41 = vcombine.high %v5025_v34, %v5033_v35  ;;  %v5034_v42 = vcombine.low %v5009_v32, %v5017_v33  ;;  %v5050_v58 = vcombine.low %v5025_v34, %v5033_v35 }
 0x710   : > { %v5049_v46 = vrot.slane %v5035_v40, %v6813_v13  ;;  %v5065_v47 = vrot.slane %v5051_v41, %v6813_v13  ;;  %v5042_v48 = vrot.slane %v5034_v42, %v6813_v13  ;;  %v5058_v49 = vrot.slane %v5050_v58, %v6813_v13 }
 0x711   : > { %v6323_v13 = vpack.c.bf16 %v7174_v56, %v7172_v3 }
 0x712   : > { %v5068_v6 = vcombine.low %v5049_v46, %v5065_v47  ;;  %v5067_v51 = vcombine.high %v5042_v48, %v5058_v49  ;;  %v5069_v52 = vcombine.high %v5049_v46, %v5065_v47  ;;  %v5066_v4 = vcombine.low %v5042_v48, %v5058_v49 }
 0x714   : > { %5075 = vrot.lane.b32.xlu1 %v5068_v6, %s6619_s12  ;;  %5071 = vrot.lane.b32.xlu0 %v5067_v51, %s6620_s19  ;;  %s6513_s12 = scalar_lea.vmem %s5631_s26, 128  ;;  %s6622_s19 = smov [#allocation4]  }
 0x715   : > { %p6514_p11 = scmp.ne.s32.totalorder %s5631_s26, %s6513_s12 }
 0x717   : > { %p6515_p12 = pnand %p6514_p11, %p6707_p5 }
 0x718   : > { %5079 = vrot.lane.b32.xlu0 %v5069_v52, %s6621_s20  ;;  %s6517_s20 = sshll.u32 %s6622_s19, 4  ;;  %s6518_s20 = int_to_ptr.vmem [resolvable:$false] %s6517_s20 }
 0x719   : > { %p6516_p13 = pneg %p6515_p12  ;;  %s6519_s17 = scalar_lea.vmem %s6518_s20, 256 }
 0x71a   : > { %p6520_p0 = scmp.lt.s32.totalorder %s5631_s26, %s6518_s20  ;;  %p6521_p1 = scmp.lt.s32.totalorder %s6519_s17, %s6513_s12 }
 0x71c   : > { %p6522_p2 = por %p6521_p1, %p6520_p0 }
 0x71e   : > { %p6523_p3 = pnand %p6522_p2, %p6516_p13 }
 0x786   : > { %v5072_v59 = vpop.permute.xlu0 %5071  ;;  %v5076_v63 = vpop.permute.xlu1 %5075 }
 0x787   : > { %v5082_v44 = vsel %vm1285_vm2, %v5066_v4, %v5072_v59 }
 0x788   : > { %v5084_v0 = vsel %vm5083_vm3, %v5082_v44, %v5076_v63 }
 0x78a   : > { %v5080_v45 = vpop.permute.xlu0 %5079 }
 0x78b   : > { %v5086_v5 = vsel %vm5085_vm4, %v5084_v0, %v5080_v45 }
 0x78c   : > { %v5099_v7 = vsel %vm313_vm0, %v5086_v5, 0 }
 0x78d   : > { %v5170_v8 = vand.u32 4294901760, %v5099_v7 }
 0x78f   : > { %v5171_v14 = vsub.f32 %v5099_v7, %v5170_v8  ;;  %6228 = vmatmul.mubr.f32.vlgmr.msra.gmra.mrb[10].mxu1 %v5170_v8 }
 0x790   : > { %6330 = vmatpush3.bf16.msra.mxu1 %v6311_v43  ;;  %6249 = vmatprep.mubr.msk.f32.mxu1 %vm6610_vm1, %v6611_v15 }
 0x791   : > { %6331 = vmatprep.subr.bf16.mxu1 %v6609_v10  ;;  %v5172_v3 = vand.u32 4294901760, %v5171_v14 }
 0x793   : > { %v5173_v56 = vsub.f32 %v5171_v14, %v5172_v3 }
 0x794   : > { %6333 = vmatpush3.bf16.msra.mxu1 %v6314_v50 }
 0x795   : > { %6340 = vmatprep.subr.bf16.mxu1 %v6609_v10  ;;  %v5174_v60 = vand.u32 4294901760, %v5173_v56 }
 0x797   : > { %6250 = vmatmul.mubr.f32.vlgmr.msra.gmra.mrb[12].mxu1 %v5172_v3  ;;  %6217 = vmatmul.mubr.f32.vlgmr.msra.gmra.mrb[8].mxu0 %v5174_v60 }
 0x798   : > { %6324 = vmatpush3.bf16.msra.mxu0 %v6323_v13  ;;  %6342 = vmatpush3.bf16.msra.mxu1 %v6311_v43 }
 0x799   : > { %6325 = vmatprep.subr.bf16.mxu0 %v6609_v10  ;;  %6343 = vmatprep.subr.bf16.mxu1 %v6609_v10 }
 0x79a   : > { %6238 = vmatprep.mubr.msk.f32.mxu0 %vm6610_vm1, %v6611_v15  ;;  %6271 = vmatprep.mubr.msk.f32.mxu1 %vm6610_vm1, %v6611_v15 }
 0x79c   : > { %6327 = vmatpush3.bf16.msra.mxu0 %v6326_v53  ;;  %6345 = vmatpush3.bf16.msra.mxu1 %v6314_v50 }
 0x79d   : > { %6334 = vmatprep.subr.bf16.mxu0 %v6609_v10 }
 0x79f   : > { %6239 = vmatmul.mubr.f32.vlgmr.msra.gmra.mrb[10].mxu0 %v5171_v14  ;;  %6272 = vmatmul.mubr.f32.vlgmr.msra.gmra.mrb[14].mxu1 %v5170_v8 }
 0x7a0   : > { %6336 = vmatpush3.bf16.msra.mxu0 %v6335_v54  ;;  %6260 = vmatprep.mubr.msk.f32.mxu0 %vm6610_vm1, %v6611_v15 }
 0x7a1   : > { %6337 = vmatprep.subr.bf16.mxu0 %v6609_v10 }
 0x7a4   : > { %6339 = vmatpush3.bf16.msra.mxu0 %v6338_v57 }
 0x7a7   : > { %6261 = vmatmul.mubr.f32.vlgmr.msra.gmra.mrb[12].mxu0 %v5170_v8 }
 0x7a8   : > { %6526 = shalt.err (!%p6523_p3)
}
 0x7a9   : > { %s6527_s18 = scalar_lea.hbm %s7248_s25, 128  ;;  %s6531_s19 = scalar_lea.hbm %s7332_s8, 256 }
 0x7aa   : > { %p6528_p4 = scmp.ne.s32.totalorder %s7248_s25, %s6527_s18  ;;  %p6532_p9 = scmp.lt.u32.totalorder %s7248_s25, %s7332_s8 }
 0x7ab   : > { %p6533_p10 = scmp.lt.u32.totalorder %s6531_s19, %s6527_s18  ;;  %p6535_p12 = scmp.lt.u32.totalorder %s6527_s18, %s7248_s25 }
 0x7ac   : > { %p6529_p7 = pnand %p6528_p4, %p6707_p5 }
 0x7ad   : > { %p6534_p11 = por %p6533_p10, %p6532_p9 }
 0x7ae   : > { %p6530_p8 = pneg %p6529_p7 }
 0x7af   : > { %p6536_p13 = por %p6535_p12, %p6534_p11 }
 0x7b1   : > { %p6537_p0 = pnand %p6536_p13, %p6530_p8 }
 0x7b3   : > { %6540 = shalt.err (!%p6537_p0)
}
 0x7b4   : > { %6438 = dma.vmem_to_hbm [thread:$0]  (%p6707_p5), %s5631_s26, 128, %s7248_s25, %s5604_s10   ;;  %v5739_v61 = vld [vmem:[%s7330_s6] ss:$0 sm:$0xff] }
 0x7b5   : > { %s7337_s22 = sshll.u32 %s7099_s13, 3  ;;  %v6512_v26 = vld [vmem:[%s6722_s21] sm:$0xff]  ;;  %s7338_s10 = sshll.u32 %s6690_s9, 7 }
 0x7b6   : > { %s300_s25 = scalar_lea.vmem [#allocation2], %s7337_s22  ;;  %s7280_s24 = scalar_lea.hbm %s7331_s7, %s7338_s10 }
 0x7b7   : > { %s5617_s26 = sshll.u32 %s300_s25, 4  ;;  %s5599_s19 = scalar_lea.sflag [#allocation3], %s7099_s13  ;;  %s7282_s26 = int_to_ptr.vmem [resolvable:$true] %s5617_s26 }
 0x7b8   : > { %s6541_s20 = scalar_lea.vmem %s7282_s26, 128  ;;  %s6623_s21 = smov [#allocation2]  }
 0x7b9   : > { %p6542_p1 = scmp.ne.s32.totalorder %s7282_s26, %s6541_s20  ;;  %s6545_s9 = sshll.u32 %s6623_s21, 4  ;;  %s6546_s9 = int_to_ptr.vmem [resolvable:$false] %s6545_s9 }
 0x7ba   : > { %s6547_s17 = scalar_lea.vmem %s6546_s9, 256  ;;  %p6548_p4 = scmp.lt.s32.totalorder %s7282_s26, %s6546_s9 }
 0x7bb   : > { %p6543_p2 = pnand %p6542_p1, %p6707_p5  ;;  %p6549_p7 = scmp.lt.s32.totalorder %s6547_s17, %s6541_s20 }
 0x7bd   : > { %p6544_p3 = pneg %p6543_p2  ;;  %p6550_p8 = por %p6549_p7, %p6548_p4 }
 0x7bf   : > { %p6551_p9 = pnand %p6550_p8, %p6544_p3 }
 0x862   : > { %v5267_v10 = vpop.f32.mrb[10].mxu1 }
 0x863   : > { %v6229_v15 = vpop.f32.mrb[11].mxu1 }
 0x86a   : > { %v5424_v11 = vpop.f32.mrb[12].mxu1  ;;  %v5176_v12 = vpop.f32.mrb[8].mxu0 }
 0x86b   : > { %v5177_v1 = vadd.f32 %v5739_v61, %v5176_v12  ;;  %v6251_v16 = vpop.f32.mrb[13].mxu1  ;;  %v6218_v17 = vpop.f32.mrb[9].mxu0 }
 0x86d   : > { %v5268_v9 = vadd.f32 %v5267_v10, %v5177_v1 }
 0x872   : > { %v5347_v18 = vpop.f32.mrb[10].mxu0  ;;  %v5582_v19 = vpop.f32.mrb[14].mxu1 }
 0x873   : > { %v5348_v37 = vadd.f32 %v5347_v18, %v5268_v9  ;;  %v6240_v38 = vpop.f32.mrb[11].mxu0  ;;  %v6273_v39 = vpop.f32.mrb[15].mxu1 }
 0x875   : > { %v5425_v20 = vadd.f32 %v5424_v11, %v5348_v37 }
 0x87a   : > { %v5507_v21 = vpop.f32.mrb[12].mxu0 }
 0x87b   : > { %v5508_v23 = vadd.f32 %v5507_v21, %v5425_v20  ;;  %v6262_v24 = vpop.f32.mrb[13].mxu0 }
 0x87d   : > { %v5583_v25 = vadd.f32 %v5582_v19, %v5508_v23 }
 0x87f   : > { %v5586_v22 = vadd.f32 %v6512_v26, %v5583_v25 }
 0x881   : > { %5587 = vst.msk [vmem:[%s300_s25] sm:$0xff] %vm313_vm0, %v5586_v22 }
 0x882   : > { %6554 = shalt.err (!%p6551_p9)
}
 0x883   : > { %s6555_s13 = scalar_lea.hbm %s7280_s24, 128  ;;  %s6559_s25 = scalar_lea.hbm %s7331_s7, 256 }
 0x884   : > { %p6556_p10 = scmp.ne.s32.totalorder %s7280_s24, %s6555_s13  ;;  %p6560_p13 = scmp.lt.u32.totalorder %s7280_s24, %s7331_s7 }
 0x885   : > { %p6561_p0 = scmp.lt.u32.totalorder %s6559_s25, %s6555_s13  ;;  %p6563_p2 = scmp.lt.u32.totalorder %s6555_s13, %s7280_s24 }
 0x886   : > { %p6557_p11 = pnand %p6556_p10, %p6707_p5 }
 0x887   : > { %p6562_p1 = por %p6561_p0, %p6560_p13 }
 0x888   : > { %p6558_p12 = pneg %p6557_p11 }
 0x889   : > { %p6564_p3 = por %p6563_p2, %p6562_p1 }
 0x88b   : > { %p6565_p4 = pnand %p6564_p3, %p6558_p12 }
 0x88d   : > { %6568 = shalt.err (!%p6565_p4)
}
 0x88e   : > { %6437 = dma.vmem_to_hbm [thread:$0]  (%p6707_p5), %s7282_s26, 128, %s7280_s24, %s5599_s19  }
 0x88f PF: > { %p6448_p7 = scmp.ge.s32.totalorder %s6607_s30, 2  ;;  %s5642_s23 = sand.u32 1, %s6595_s27  }
 0x890   : > { %s5643_s20 = scalar_lea.sflag [#allocation3], %s5642_s23 }
 0x891   : > { %p6442_p8 = pnand %p6448_p7, %p6711_p6 }
 0x893   : > { %6586 = dma.done.wait (!%p6442_p8), %s5643_s20, 128  }
 0x894   : > { %6588 = vsyncadd (!%p6442_p8), %s5643_s20, 4294967168  ;;  %s5652_s21 = scalar_lea.sflag [#allocation5], %s5642_s23 }
 0x895   : > { %6590 = dma.done.wait (!%p6442_p8), %s5652_s21, 128  }
 0x896   : > { %6592 = vsyncadd (!%p6442_p8), %s5652_s21, 4294967168  ;;  %p22_p5 = scmp.ge.s32.totalorder %s6694_s11, 4   ;;  %s7339_s27 = smov %s6599_s28 }
 0x897   : > { %s7340_s28 = smov %s6603_s29  ;;  %s7341_s29 = smov %s6705_s14 }
 0x898   : > { %s7342_s30 = smov %s6694_s11  ;;  %24 = sbr.rel (!%p22_p5) target bundleno = 5 (0x5), region = 100 }
 0x89f   :  { %5657 = vsyncpa [#allocation3], 1 }
 0x8a0   :  { %5659 = vsyncpa [#allocation3 + $0x1], 1 }
 0x8a1   :  { %5660 = vsyncpa [#allocation5], 1 }
 0x8a2   :  { %5662 = vsyncpa [#allocation5 + $0x1], 1 }

</bundles_post_ra>
